<compile_context>
chip_gen: v5e
topology: v5e:2x2
jax: 0.10.0
libtpu: 0.0.40
codegen_flags: <defaults>
</compile_context>

<pallas_src>
import jax
import jax.numpy as jnp
from jax.experimental import pallas as pl
from jax.experimental.pallas import tpu as pltpu  # noqa: F401 (kept for TPU-specific tuning hooks)

# ----------------------- small synthetic BERT config ------------------------
VOCAB = 128
MAX_POS = 16
TYPE_VOCAB = 2
HIDDEN = 32
N_HEADS = 4
HEAD_DIM = HIDDEN // N_HEADS
INTER = 64
N_LAYERS = 2
NUM_LABELS = 3
LN_EPS = 1e-12

BATCH = 2
SEQ = 8


# ------------------------------ kernel helpers ------------------------------
def _layernorm(x, gamma, beta):
    mu = jnp.mean(x, axis=-1, keepdims=True)
    var = jnp.mean(jnp.square(x - mu), axis=-1, keepdims=True)
    inv = jax.lax.rsqrt(var + LN_EPS)
    return (x - mu) * inv * gamma + beta


def _split_heads(qkv, part):
    """(B*S, 3H) -> (B*nH, S, dH) for part in {0:Q, 1:K, 2:V}.
    Static slices + stack only (no in-kernel transposes)."""
    blocks = []
    for b in range(BATCH):
        for n in range(N_HEADS):
            c0 = part * HIDDEN + n * HEAD_DIM
            blocks.append(qkv[b * SEQ:(b + 1) * SEQ, c0:c0 + HEAD_DIM])
    return jnp.stack(blocks, axis=0)


def _merge_heads(ctx):
    """(B*nH, S, dH) -> (B*S, H): heads concatenated along lanes per batch."""
    rows = []
    for b in range(BATCH):
        rows.append(jnp.concatenate(
            [ctx[b * N_HEADS + n] for n in range(N_HEADS)], axis=-1))
    return jnp.concatenate(rows, axis=0)


# --------------------------- fused forward kernel ----------------------------
def fused_bert_kernel(emb_ref, bias_ref, emb_g_ref, emb_b_ref,
                      wqkv_ref, bqkv_ref, wo_ref, bo_ref,
                      ln1_g_ref, ln1_b_ref, w1_ref, b1_ref,
                      w2_ref, b2_ref, ln2_g_ref, ln2_b_ref,
                      cls_w_ref, cls_b_ref, logits_ref):
    # Whole batch in one step: activations are (B*S, H).
    x = _layernorm(emb_ref[...], emb_g_ref[...], emb_b_ref[...])   # (B*S, H) f32
    bias = bias_ref[...]                                            # (B*nH,1,S) f32

    # TODO(synk): static Python loop (N_LAYERS=2); move the layer loop to a
    # grid axis with layer-indexed weight BlockSpecs if N_LAYERS grows.
    for l in range(N_LAYERS):
        xb = x.astype(jnp.bfloat16)

        # Single 2D QKV matmul (Q columns pre-scaled by 1/sqrt(dH) at pack
        # time); one f32 bias add, then ONE bf16 cast of the whole tensor.
        qkv = (jnp.dot(xb, wqkv_ref[l], preferred_element_type=jnp.float32)
               + bqkv_ref[l]).astype(jnp.bfloat16)                  # (B*S, 3H)

        q = _split_heads(qkv, 0)            # (B*nH, S, dH) bf16
        k = _split_heads(qkv, 1)
        v = _split_heads(qkv, 2)

        # Scores + softmax, batched over (batch*heads), f32.
        s = jnp.einsum('nqd,nkd->nqk', q, k,
                       preferred_element_type=jnp.float32) + bias   # (B*nH,S,S)
        s = s - jnp.max(s, axis=-1, keepdims=True)
        p = jnp.exp(s)
        p = p * pl.reciprocal(jnp.sum(p, axis=-1, keepdims=True), approx=True)

        ctx = jnp.einsum('nqk,nkd->nqd', p.astype(jnp.bfloat16), v,
                         preferred_element_type=jnp.float32)        # (B*nH,S,dH)

        # Single 2D output projection (== concat(heads) @ Wo).
        ctx2d = _merge_heads(ctx.astype(jnp.bfloat16))              # (B*S, H)
        attn = jnp.dot(ctx2d, wo_ref[l],
                       preferred_element_type=jnp.float32) + bo_ref[l]
        h = _layernorm(x + attn, ln1_g_ref[l], ln1_b_ref[l])

        # Feed-forward (dense 2D matmuls, bf16 operands, f32 accumulate).
        ff = jnp.dot(h.astype(jnp.bfloat16), w1_ref[l],
                     preferred_element_type=jnp.float32) + b1_ref[l]
        # TODO(synk): HF BERT uses exact (erf) GELU; tanh approximation here.
        ff = jax.nn.gelu(ff, approximate=True)
        ff = jnp.dot(ff.astype(jnp.bfloat16), w2_ref[l],
                     preferred_element_type=jnp.float32) + b2_ref[l]
        x = _layernorm(h + ff, ln2_g_ref[l], ln2_b_ref[l])

    # Classifier on the CLS rows only (nn.Dropout(0.3) is identity at eval).
    cls = jnp.concatenate([x[b * SEQ:b * SEQ + 1, :] for b in range(BATCH)],
                          axis=0)                                   # (B, H)
    logits_ref[...] = (jnp.dot(cls.astype(jnp.bfloat16), cls_w_ref[...],
                               preferred_element_type=jnp.float32)
                       + cls_b_ref[...])                            # (B, labels)


# ------------------------------ parameter init -------------------------------
def init_params(key):
    n_keys = 4 + N_LAYERS
    keys = jax.random.split(key, n_keys)

    def nrm(k, shape):
        return (0.02 * jax.random.normal(k, shape)).astype(jnp.float32)

    params = {
        'word_emb': nrm(keys[0], (VOCAB, HIDDEN)),
        'pos_emb': nrm(keys[1], (MAX_POS, HIDDEN)),
        'type_emb': nrm(keys[2], (TYPE_VOCAB, HIDDEN)),
        'emb_ln_g': jnp.ones((1, HIDDEN), jnp.float32),
        'emb_ln_b': jnp.zeros((1, HIDDEN), jnp.float32),
        'cls_w': nrm(keys[3], (HIDDEN, NUM_LABELS)),   # Linear.weight.T
        'cls_b': jnp.zeros((1, NUM_LABELS), jnp.float32),
        'layers': [],
    }
    for l in range(N_LAYERS):
        lk = jax.random.split(keys[4 + l], 6)
        params['layers'].append({
            'wq': nrm(lk[0], (HIDDEN, HIDDEN)), 'bq': jnp.zeros((1, HIDDEN), jnp.float32),
            'wk': nrm(lk[1], (HIDDEN, HIDDEN)), 'bk': jnp.zeros((1, HIDDEN), jnp.float32),
            'wv': nrm(lk[2], (HIDDEN, HIDDEN)), 'bv': jnp.zeros((1, HIDDEN), jnp.float32),
            'wo': nrm(lk[3], (HIDDEN, HIDDEN)), 'bo': jnp.zeros((1, HIDDEN), jnp.float32),
            'ln1_g': jnp.ones((1, HIDDEN), jnp.float32),
            'ln1_b': jnp.zeros((1, HIDDEN), jnp.float32),
            'w1': nrm(lk[4], (HIDDEN, INTER)), 'b1': jnp.zeros((1, INTER), jnp.float32),
            'w2': nrm(lk[5], (INTER, HIDDEN)), 'b2': jnp.zeros((1, HIDDEN), jnp.float32),
            'ln2_g': jnp.ones((1, HIDDEN), jnp.float32),
            'ln2_b': jnp.zeros((1, HIDDEN), jnp.float32),
        })
    return params


def pack_params(p):
    """Stack per-layer weights, pack Q|K|V as one (H, 3H) matrix per layer,
    bake 1/sqrt(head_dim) into the Q columns/bias, bf16-cast matmul weights."""
    scale = jnp.float32(1.0 / (HEAD_DIM ** 0.5))

    wqkv, bqkv, wo, bo = [], [], [], []
    ln1_g, ln1_b, w1, b1, w2, b2, ln2_g, ln2_b = ([] for _ in range(8))
    for lp in p['layers']:
        wqkv.append(jnp.concatenate([lp['wq'] * scale, lp['wk'], lp['wv']],
                                    axis=1))                         # (H, 3H)
        bqkv.append(jnp.concatenate([lp['bq'] * scale, lp['bk'], lp['bv']],
                                    axis=1))                         # (1, 3H)
        wo.append(lp['wo'])                                          # (H, H)
        bo.append(lp['bo'])
        ln1_g.append(lp['ln1_g']); ln1_b.append(lp['ln1_b'])
        w1.append(lp['w1']); b1.append(lp['b1'])
        w2.append(lp['w2']); b2.append(lp['b2'])
        ln2_g.append(lp['ln2_g']); ln2_b.append(lp['ln2_b'])

    st = lambda xs: jnp.stack(xs, axis=0)
    return {
        'word_emb': p['word_emb'], 'pos_emb': p['pos_emb'], 'type_emb': p['type_emb'],
        'emb_ln_g': p['emb_ln_g'], 'emb_ln_b': p['emb_ln_b'],
        'wqkv': st(wqkv).astype(jnp.bfloat16), 'bqkv': st(bqkv),
        'wo': st(wo).astype(jnp.bfloat16), 'bo': st(bo),
        'ln1_g': st(ln1_g), 'ln1_b': st(ln1_b),
        'w1': st(w1).astype(jnp.bfloat16), 'b1': st(b1),
        'w2': st(w2).astype(jnp.bfloat16), 'b2': st(b2),
        'ln2_g': st(ln2_g), 'ln2_b': st(ln2_b),
        'cls_w': p['cls_w'].astype(jnp.bfloat16), 'cls_b': p['cls_b'],
    }


# --------------------------------- forward -----------------------------------
def bert_with_linear_classifier_forward(packed, input_ids, attention_mask):
    B, S = input_ids.shape

    # Embedding gathers + sum kept in plain JAX (glue); LN runs in the kernel.
    emb = (packed['word_emb'][input_ids]
           + packed['pos_emb'][:S][None, :, :]
           + packed['type_emb'][0][None, None, :])                  # token_type_ids = 0
    emb2d = emb.reshape(B * S, HIDDEN)

    # Additive attention-mask bias, pre-expanded per (batch, head): (B*nH,1,S).
    mask = attention_mask.astype(jnp.float32)
    bias = (1.0 - mask)[:, None, None, :] * jnp.float32(-1e9)       # (B,1,1,S)
    bias = jnp.broadcast_to(bias, (B, N_HEADS, 1, S)).reshape(B * N_HEADS, 1, S)

    args = (emb2d, bias,
            packed['emb_ln_g'], packed['emb_ln_b'],
            packed['wqkv'], packed['bqkv'], packed['wo'], packed['bo'],
            packed['ln1_g'], packed['ln1_b'],
            packed['w1'], packed['b1'], packed['w2'], packed['b2'],
            packed['ln2_g'], packed['ln2_b'],
            packed['cls_w'], packed['cls_b'])

    # Single kernel invocation, no grid: all tensors are whole-array VMEM
    # blocks (<1 MiB total), batch folded into the matmul M dimension.
    # TODO(synk): on v7x (2 TensorCores) reintroduce a batch grid axis with
    # pltpu.CORE_PARALLEL once per-element work is large enough to amortize
    # the extra grid step; at B=2, S=8, H=32 a single step is faster.
    logits = pl.pallas_call(
        fused_bert_kernel,
        out_shape=jax.ShapeDtypeStruct((B, NUM_LABELS), jnp.float32),
    )(*args)

    return {'logits': logits}


# ----------------------------------- main -------------------------------------
if __name__ == "__main__":
    key = jax.random.PRNGKey(0)
    pkey, ikey = jax.random.split(key)

    params = init_params(pkey)
    packed = pack_params(params)

    input_ids = jax.random.randint(ikey, (BATCH, SEQ), 0, VOCAB, dtype=jnp.int32)
    attention_mask = jnp.array(
        [[1, 1, 1, 1, 1, 1, 1, 1],
         [1, 1, 1, 1, 1, 1, 0, 0]], dtype=jnp.int32)

    fwd = jax.jit(bert_with_linear_classifier_forward)
    out = fwd(packed, input_ids, attention_mask)
    logits = jax.block_until_ready(out['logits'])

    assert logits.shape == (BATCH, NUM_LABELS)
    assert logits.dtype == jnp.float32
    assert bool(jnp.all(jnp.isfinite(logits)))
    print("KERNEL_OK")
</pallas_src>

<mosaic_0001>
module attributes {stable_mosaic.version = 11 : i64} {
  func.func @fused_bert_kernel(%arg0: memref<16x32xf32, #tpu.memory_space<vmem>>, %arg1: memref<8x1x8xf32, #tpu.memory_space<vmem>>, %arg2: memref<1x32xf32, #tpu.memory_space<vmem>>, %arg3: memref<1x32xf32, #tpu.memory_space<vmem>>, %arg4: memref<2x32x96xbf16, #tpu.memory_space<vmem>>, %arg5: memref<2x1x96xf32, #tpu.memory_space<vmem>>, %arg6: memref<2x32x32xbf16, #tpu.memory_space<vmem>>, %arg7: memref<2x1x32xf32, #tpu.memory_space<vmem>>, %arg8: memref<2x1x32xf32, #tpu.memory_space<vmem>>, %arg9: memref<2x1x32xf32, #tpu.memory_space<vmem>>, %arg10: memref<2x32x64xbf16, #tpu.memory_space<vmem>>, %arg11: memref<2x1x64xf32, #tpu.memory_space<vmem>>, %arg12: memref<2x64x32xbf16, #tpu.memory_space<vmem>>, %arg13: memref<2x1x32xf32, #tpu.memory_space<vmem>>, %arg14: memref<2x1x32xf32, #tpu.memory_space<vmem>>, %arg15: memref<2x1x32xf32, #tpu.memory_space<vmem>>, %arg16: memref<32x3xbf16, #tpu.memory_space<vmem>>, %arg17: memref<1x3xf32, #tpu.memory_space<vmem>>, %arg18: memref<2x3xf32, #tpu.memory_space<vmem>>) attributes {dimension_semantics = [], scalar_prefetch = 0 : i64, scratch_operands = 0 : i64, tpu.core_type = #tpu.core_type<tc>} {
    %c0 = arith.constant 0 : index
    %c0_0 = arith.constant 0 : index
    %0 = vector.load %arg0[%c0, %c0_0] : memref<16x32xf32, #tpu.memory_space<vmem>>, vector<16x32xf32>
    %c0_1 = arith.constant 0 : index
    %c0_2 = arith.constant 0 : index
    %1 = vector.load %arg2[%c0_1, %c0_2] : memref<1x32xf32, #tpu.memory_space<vmem>>, vector<1x32xf32>
    %c0_3 = arith.constant 0 : index
    %c0_4 = arith.constant 0 : index
    %2 = vector.load %arg3[%c0_3, %c0_4] : memref<1x32xf32, #tpu.memory_space<vmem>>, vector<1x32xf32>
    %cst = arith.constant dense<0.000000e+00> : vector<16xf32>
    %3 = vector.multi_reduction <add>, %0, %cst [1] : vector<16x32xf32> to vector<16xf32>
    %4 = vector.shape_cast %3 : vector<16xf32> to vector<16x1xf32>
    %cst_5 = arith.constant 3.200000e+01 : f32
    %5 = vector.broadcast %cst_5 : f32 to vector<16x1xf32>
    %6 = arith.divf %4, %5 : vector<16x1xf32>
    %7 = vector.broadcast %6 : vector<16x1xf32> to vector<16x32xf32>
    %8 = arith.subf %0, %7 : vector<16x32xf32>
    %9 = arith.mulf %8, %8 : vector<16x32xf32>
    %cst_6 = arith.constant dense<0.000000e+00> : vector<16xf32>
    %10 = vector.multi_reduction <add>, %9, %cst_6 [1] : vector<16x32xf32> to vector<16xf32>
    %11 = vector.shape_cast %10 : vector<16xf32> to vector<16x1xf32>
    %cst_7 = arith.constant 3.200000e+01 : f32
    %12 = vector.broadcast %cst_7 : f32 to vector<16x1xf32>
    %13 = arith.divf %11, %12 : vector<16x1xf32>
    %cst_8 = arith.constant 9.99999996E-13 : f32
    %14 = vector.broadcast %cst_8 : f32 to vector<16x1xf32>
    %15 = arith.addf %13, %14 : vector<16x1xf32>
    %16 = math.rsqrt %15 : vector<16x1xf32>
    %17 = vector.broadcast %6 : vector<16x1xf32> to vector<16x32xf32>
    %18 = arith.subf %0, %17 : vector<16x32xf32>
    %19 = vector.broadcast %16 : vector<16x1xf32> to vector<16x32xf32>
    %20 = arith.mulf %18, %19 : vector<16x32xf32>
    %21 = vector.broadcast %1 : vector<1x32xf32> to vector<16x32xf32>
    %22 = arith.mulf %20, %21 : vector<16x32xf32>
    %23 = vector.broadcast %2 : vector<1x32xf32> to vector<16x32xf32>
    %24 = arith.addf %22, %23 : vector<16x32xf32>
    %c0_9 = arith.constant 0 : index
    %c0_10 = arith.constant 0 : index
    %c0_11 = arith.constant 0 : index
    %25 = vector.load %arg1[%c0_9, %c0_10, %c0_11] : memref<8x1x8xf32, #tpu.memory_space<vmem>>, vector<8x1x8xf32>
    %26 = arith.truncf %24 : vector<16x32xf32> to vector<16x32xbf16>
    %c0_12 = arith.constant 0 : index
    %c0_13 = arith.constant 0 : index
    %c0_14 = arith.constant 0 : index
    %27 = vector.load %arg4[%c0_12, %c0_13, %c0_14] : memref<2x32x96xbf16, #tpu.memory_space<vmem>>, vector<1x32x96xbf16>
    %28 = vector.shape_cast %27 : vector<1x32x96xbf16> to vector<32x96xbf16>
    %cst_15 = arith.constant dense<0.000000e+00> : vector<16x96xf32>
    %29 = tpu.matmul %26, %28, %cst_15 {dimension_numbers = #tpu.dot_dimension_numbers<[1], [0], [0], [1], [0, 0, 1, 1], [], []>} : vector<16x32xbf16>, vector<32x96xbf16>, vector<16x96xf32> -> vector<16x96xf32>
    %c0_16 = arith.constant 0 : index
    %c0_17 = arith.constant 0 : index
    %c0_18 = arith.constant 0 : index
    %30 = vector.load %arg5[%c0_16, %c0_17, %c0_18] : memref<2x1x96xf32, #tpu.memory_space<vmem>>, vector<1x1x96xf32>
    %31 = vector.shape_cast %30 : vector<1x1x96xf32> to vector<1x96xf32>
    %32 = vector.broadcast %31 : vector<1x96xf32> to vector<16x96xf32>
    %33 = arith.addf %29, %32 : vector<16x96xf32>
    %34 = arith.truncf %33 : vector<16x96xf32> to vector<16x96xbf16>
    %35 = vector.extract_strided_slice %34 {offsets = [0, 0], sizes = [8, 8], strides = [1, 1]} : vector<16x96xbf16> to vector<8x8xbf16>
    %36 = vector.extract_strided_slice %34 {offsets = [0, 8], sizes = [8, 8], strides = [1, 1]} : vector<16x96xbf16> to vector<8x8xbf16>
    %37 = vector.extract_strided_slice %34 {offsets = [0, 16], sizes = [8, 8], strides = [1, 1]} : vector<16x96xbf16> to vector<8x8xbf16>
    %38 = vector.extract_strided_slice %34 {offsets = [0, 24], sizes = [8, 8], strides = [1, 1]} : vector<16x96xbf16> to vector<8x8xbf16>
    %39 = vector.extract_strided_slice %34 {offsets = [8, 0], sizes = [8, 8], strides = [1, 1]} : vector<16x96xbf16> to vector<8x8xbf16>
    %40 = vector.extract_strided_slice %34 {offsets = [8, 8], sizes = [8, 8], strides = [1, 1]} : vector<16x96xbf16> to vector<8x8xbf16>
    %41 = vector.extract_strided_slice %34 {offsets = [8, 16], sizes = [8, 8], strides = [1, 1]} : vector<16x96xbf16> to vector<8x8xbf16>
    %42 = vector.extract_strided_slice %34 {offsets = [8, 24], sizes = [8, 8], strides = [1, 1]} : vector<16x96xbf16> to vector<8x8xbf16>
    %43 = vector.shape_cast %35 : vector<8x8xbf16> to vector<1x8x8xbf16>
    %44 = vector.shape_cast %36 : vector<8x8xbf16> to vector<1x8x8xbf16>
    %45 = vector.shape_cast %37 : vector<8x8xbf16> to vector<1x8x8xbf16>
    %46 = vector.shape_cast %38 : vector<8x8xbf16> to vector<1x8x8xbf16>
    %47 = vector.shape_cast %39 : vector<8x8xbf16> to vector<1x8x8xbf16>
    %48 = vector.shape_cast %40 : vector<8x8xbf16> to vector<1x8x8xbf16>
    %49 = vector.shape_cast %41 : vector<8x8xbf16> to vector<1x8x8xbf16>
    %50 = vector.shape_cast %42 : vector<8x8xbf16> to vector<1x8x8xbf16>
    %51 = tpu.concatenate %43, %44, %45, %46, %47, %48, %49, %50 in 0 : vector<1x8x8xbf16>, vector<1x8x8xbf16>, vector<1x8x8xbf16>, vector<1x8x8xbf16>, vector<1x8x8xbf16>, vector<1x8x8xbf16>, vector<1x8x8xbf16>, vector<1x8x8xbf16> -> vector<8x8x8xbf16>
    %52 = vector.extract_strided_slice %34 {offsets = [0, 32], sizes = [8, 8], strides = [1, 1]} : vector<16x96xbf16> to vector<8x8xbf16>
    %53 = vector.extract_strided_slice %34 {offsets = [0, 40], sizes = [8, 8], strides = [1, 1]} : vector<16x96xbf16> to vector<8x8xbf16>
    %54 = vector.extract_strided_slice %34 {offsets = [0, 48], sizes = [8, 8], strides = [1, 1]} : vector<16x96xbf16> to vector<8x8xbf16>
    %55 = vector.extract_strided_slice %34 {offsets = [0, 56], sizes = [8, 8], strides = [1, 1]} : vector<16x96xbf16> to vector<8x8xbf16>
    %56 = vector.extract_strided_slice %34 {offsets = [8, 32], sizes = [8, 8], strides = [1, 1]} : vector<16x96xbf16> to vector<8x8xbf16>
    %57 = vector.extract_strided_slice %34 {offsets = [8, 40], sizes = [8, 8], strides = [1, 1]} : vector<16x96xbf16> to vector<8x8xbf16>
    %58 = vector.extract_strided_slice %34 {offsets = [8, 48], sizes = [8, 8], strides = [1, 1]} : vector<16x96xbf16> to vector<8x8xbf16>
    %59 = vector.extract_strided_slice %34 {offsets = [8, 56], sizes = [8, 8], strides = [1, 1]} : vector<16x96xbf16> to vector<8x8xbf16>
    %60 = vector.shape_cast %52 : vector<8x8xbf16> to vector<1x8x8xbf16>
    %61 = vector.shape_cast %53 : vector<8x8xbf16> to vector<1x8x8xbf16>
    %62 = vector.shape_cast %54 : vector<8x8xbf16> to vector<1x8x8xbf16>
    %63 = vector.shape_cast %55 : vector<8x8xbf16> to vector<1x8x8xbf16>
    %64 = vector.shape_cast %56 : vector<8x8xbf16> to vector<1x8x8xbf16>
    %65 = vector.shape_cast %57 : vector<8x8xbf16> to vector<1x8x8xbf16>
    %66 = vector.shape_cast %58 : vector<8x8xbf16> to vector<1x8x8xbf16>
    %67 = vector.shape_cast %59 : vector<8x8xbf16> to vector<1x8x8xbf16>
    %68 = tpu.concatenate %60, %61, %62, %63, %64, %65, %66, %67 in 0 : vector<1x8x8xbf16>, vector<1x8x8xbf16>, vector<1x8x8xbf16>, vector<1x8x8xbf16>, vector<1x8x8xbf16>, vector<1x8x8xbf16>, vector<1x8x8xbf16>, vector<1x8x8xbf16> -> vector<8x8x8xbf16>
    %69 = vector.extract_strided_slice %34 {offsets = [0, 64], sizes = [8, 8], strides = [1, 1]} : vector<16x96xbf16> to vector<8x8xbf16>
    %70 = vector.extract_strided_slice %34 {offsets = [0, 72], sizes = [8, 8], strides = [1, 1]} : vector<16x96xbf16> to vector<8x8xbf16>
    %71 = vector.extract_strided_slice %34 {offsets = [0, 80], sizes = [8, 8], strides = [1, 1]} : vector<16x96xbf16> to vector<8x8xbf16>
    %72 = vector.extract_strided_slice %34 {offsets = [0, 88], sizes = [8, 8], strides = [1, 1]} : vector<16x96xbf16> to vector<8x8xbf16>
    %73 = vector.extract_strided_slice %34 {offsets = [8, 64], sizes = [8, 8], strides = [1, 1]} : vector<16x96xbf16> to vector<8x8xbf16>
    %74 = vector.extract_strided_slice %34 {offsets = [8, 72], sizes = [8, 8], strides = [1, 1]} : vector<16x96xbf16> to vector<8x8xbf16>
    %75 = vector.extract_strided_slice %34 {offsets = [8, 80], sizes = [8, 8], strides = [1, 1]} : vector<16x96xbf16> to vector<8x8xbf16>
    %76 = vector.extract_strided_slice %34 {offsets = [8, 88], sizes = [8, 8], strides = [1, 1]} : vector<16x96xbf16> to vector<8x8xbf16>
    %77 = vector.shape_cast %69 : vector<8x8xbf16> to vector<1x8x8xbf16>
    %78 = vector.shape_cast %70 : vector<8x8xbf16> to vector<1x8x8xbf16>
    %79 = vector.shape_cast %71 : vector<8x8xbf16> to vector<1x8x8xbf16>
    %80 = vector.shape_cast %72 : vector<8x8xbf16> to vector<1x8x8xbf16>
    %81 = vector.shape_cast %73 : vector<8x8xbf16> to vector<1x8x8xbf16>
    %82 = vector.shape_cast %74 : vector<8x8xbf16> to vector<1x8x8xbf16>
    %83 = vector.shape_cast %75 : vector<8x8xbf16> to vector<1x8x8xbf16>
    %84 = vector.shape_cast %76 : vector<8x8xbf16> to vector<1x8x8xbf16>
    %85 = tpu.concatenate %77, %78, %79, %80, %81, %82, %83, %84 in 0 : vector<1x8x8xbf16>, vector<1x8x8xbf16>, vector<1x8x8xbf16>, vector<1x8x8xbf16>, vector<1x8x8xbf16>, vector<1x8x8xbf16>, vector<1x8x8xbf16>, vector<1x8x8xbf16> -> vector<8x8x8xbf16>
    "tpu.trace_start"() <{level = 10 : i32, message = "nqd,nkd->nqk"}> : () -> ()
    %cst_19 = arith.constant dense<0.000000e+00> : vector<8x8x8xf32>
    %86 = tpu.matmul %51, %68, %cst_19 {dimension_numbers = #tpu.dot_dimension_numbers<[2], [2], [1], [1], [0, 0, 0, 1, 1, 1], [0], [0]>} : vector<8x8x8xbf16>, vector<8x8x8xbf16>, vector<8x8x8xf32> -> vector<8x8x8xf32>
    "tpu.trace_stop"() : () -> ()
    %87 = vector.broadcast %25 : vector<8x1x8xf32> to vector<8x8x8xf32>
    %88 = arith.addf %86, %87 : vector<8x8x8xf32>
    %cst_20 = arith.constant dense<0xFF800000> : vector<8x8xf32>
    %89 = vector.multi_reduction <maximumf>, %88, %cst_20 [2] : vector<8x8x8xf32> to vector<8x8xf32>
    %90 = vector.shape_cast %89 : vector<8x8xf32> to vector<8x8x1xf32>
    %91 = vector.broadcast %90 : vector<8x8x1xf32> to vector<8x8x8xf32>
    %92 = arith.subf %88, %91 : vector<8x8x8xf32>
    %93 = math.exp %92 : vector<8x8x8xf32>
    %cst_21 = arith.constant dense<0.000000e+00> : vector<8x8xf32>
    %94 = vector.multi_reduction <add>, %93, %cst_21 [2] : vector<8x8x8xf32> to vector<8x8xf32>
    %95 = vector.shape_cast %94 : vector<8x8xf32> to vector<8x8x1xf32>
    %96 = tpu.reciprocal %95 {approx = true} : vector<8x8x1xf32> -> vector<8x8x1xf32>
    %97 = vector.broadcast %96 : vector<8x8x1xf32> to vector<8x8x8xf32>
    %98 = arith.mulf %93, %97 : vector<8x8x8xf32>
    %99 = arith.truncf %98 : vector<8x8x8xf32> to vector<8x8x8xbf16>
    "tpu.trace_start"() <{level = 10 : i32, message = "nqk,nkd->nqd"}> : () -> ()
    %cst_22 = arith.constant dense<0.000000e+00> : vector<8x8x8xf32>
    %100 = tpu.matmul %99, %85, %cst_22 {dimension_numbers = #tpu.dot_dimension_numbers<[2], [1], [1], [2], [0, 0, 0, 1, 1, 2], [0], [0]>} : vector<8x8x8xbf16>, vector<8x8x8xbf16>, vector<8x8x8xf32> -> vector<8x8x8xf32>
    "tpu.trace_stop"() : () -> ()
    %101 = arith.truncf %100 : vector<8x8x8xf32> to vector<8x8x8xbf16>
    %102 = vector.extract_strided_slice %101 {offsets = [0, 0, 0], sizes = [1, 8, 8], strides = [1, 1, 1]} : vector<8x8x8xbf16> to vector<1x8x8xbf16>
    %103 = vector.shape_cast %102 : vector<1x8x8xbf16> to vector<8x8xbf16>
    %104 = vector.extract_strided_slice %101 {offsets = [1, 0, 0], sizes = [1, 8, 8], strides = [1, 1, 1]} : vector<8x8x8xbf16> to vector<1x8x8xbf16>
    %105 = vector.shape_cast %104 : vector<1x8x8xbf16> to vector<8x8xbf16>
    %106 = vector.extract_strided_slice %101 {offsets = [2, 0, 0], sizes = [1, 8, 8], strides = [1, 1, 1]} : vector<8x8x8xbf16> to vector<1x8x8xbf16>
    %107 = vector.shape_cast %106 : vector<1x8x8xbf16> to vector<8x8xbf16>
    %108 = vector.extract_strided_slice %101 {offsets = [3, 0, 0], sizes = [1, 8, 8], strides = [1, 1, 1]} : vector<8x8x8xbf16> to vector<1x8x8xbf16>
    %109 = vector.shape_cast %108 : vector<1x8x8xbf16> to vector<8x8xbf16>
    %110 = tpu.concatenate %103, %105, %107, %109 in 1 : vector<8x8xbf16>, vector<8x8xbf16>, vector<8x8xbf16>, vector<8x8xbf16> -> vector<8x32xbf16>
    %111 = vector.extract_strided_slice %101 {offsets = [4, 0, 0], sizes = [1, 8, 8], strides = [1, 1, 1]} : vector<8x8x8xbf16> to vector<1x8x8xbf16>
    %112 = vector.shape_cast %111 : vector<1x8x8xbf16> to vector<8x8xbf16>
    %113 = vector.extract_strided_slice %101 {offsets = [5, 0, 0], sizes = [1, 8, 8], strides = [1, 1, 1]} : vector<8x8x8xbf16> to vector<1x8x8xbf16>
    %114 = vector.shape_cast %113 : vector<1x8x8xbf16> to vector<8x8xbf16>
    %115 = vector.extract_strided_slice %101 {offsets = [6, 0, 0], sizes = [1, 8, 8], strides = [1, 1, 1]} : vector<8x8x8xbf16> to vector<1x8x8xbf16>
    %116 = vector.shape_cast %115 : vector<1x8x8xbf16> to vector<8x8xbf16>
    %117 = vector.extract_strided_slice %101 {offsets = [7, 0, 0], sizes = [1, 8, 8], strides = [1, 1, 1]} : vector<8x8x8xbf16> to vector<1x8x8xbf16>
    %118 = vector.shape_cast %117 : vector<1x8x8xbf16> to vector<8x8xbf16>
    %119 = tpu.concatenate %112, %114, %116, %118 in 1 : vector<8x8xbf16>, vector<8x8xbf16>, vector<8x8xbf16>, vector<8x8xbf16> -> vector<8x32xbf16>
    %120 = tpu.concatenate %110, %119 in 0 : vector<8x32xbf16>, vector<8x32xbf16> -> vector<16x32xbf16>
    %c0_23 = arith.constant 0 : index
    %c0_24 = arith.constant 0 : index
    %c0_25 = arith.constant 0 : index
    %121 = vector.load %arg6[%c0_23, %c0_24, %c0_25] : memref<2x32x32xbf16, #tpu.memory_space<vmem>>, vector<1x32x32xbf16>
    %122 = vector.shape_cast %121 : vector<1x32x32xbf16> to vector<32x32xbf16>
    %cst_26 = arith.constant dense<0.000000e+00> : vector<16x32xf32>
    %123 = tpu.matmul %120, %122, %cst_26 {dimension_numbers = #tpu.dot_dimension_numbers<[1], [0], [0], [1], [0, 0, 1, 1], [], []>} : vector<16x32xbf16>, vector<32x32xbf16>, vector<16x32xf32> -> vector<16x32xf32>
    %c0_27 = arith.constant 0 : index
    %c0_28 = arith.constant 0 : index
    %c0_29 = arith.constant 0 : index
    %124 = vector.load %arg7[%c0_27, %c0_28, %c0_29] : memref<2x1x32xf32, #tpu.memory_space<vmem>>, vector<1x1x32xf32>
    %125 = vector.shape_cast %124 : vector<1x1x32xf32> to vector<1x32xf32>
    %126 = vector.broadcast %125 : vector<1x32xf32> to vector<16x32xf32>
    %127 = arith.addf %123, %126 : vector<16x32xf32>
    %128 = arith.addf %24, %127 : vector<16x32xf32>
    %c0_30 = arith.constant 0 : index
    %c0_31 = arith.constant 0 : index
    %c0_32 = arith.constant 0 : index
    %129 = vector.load %arg8[%c0_30, %c0_31, %c0_32] : memref<2x1x32xf32, #tpu.memory_space<vmem>>, vector<1x1x32xf32>
    %130 = vector.shape_cast %129 : vector<1x1x32xf32> to vector<1x32xf32>
    %c0_33 = arith.constant 0 : index
    %c0_34 = arith.constant 0 : index
    %c0_35 = arith.constant 0 : index
    %131 = vector.load %arg9[%c0_33, %c0_34, %c0_35] : memref<2x1x32xf32, #tpu.memory_space<vmem>>, vector<1x1x32xf32>
    %132 = vector.shape_cast %131 : vector<1x1x32xf32> to vector<1x32xf32>
    %cst_36 = arith.constant dense<0.000000e+00> : vector<16xf32>
    %133 = vector.multi_reduction <add>, %128, %cst_36 [1] : vector<16x32xf32> to vector<16xf32>
    %134 = vector.shape_cast %133 : vector<16xf32> to vector<16x1xf32>
    %cst_37 = arith.constant 3.200000e+01 : f32
    %135 = vector.broadcast %cst_37 : f32 to vector<16x1xf32>
    %136 = arith.divf %134, %135 : vector<16x1xf32>
    %137 = vector.broadcast %136 : vector<16x1xf32> to vector<16x32xf32>
    %138 = arith.subf %128, %137 : vector<16x32xf32>
    %139 = arith.mulf %138, %138 : vector<16x32xf32>
    %cst_38 = arith.constant dense<0.000000e+00> : vector<16xf32>
    %140 = vector.multi_reduction <add>, %139, %cst_38 [1] : vector<16x32xf32> to vector<16xf32>
    %141 = vector.shape_cast %140 : vector<16xf32> to vector<16x1xf32>
    %cst_39 = arith.constant 3.200000e+01 : f32
    %142 = vector.broadcast %cst_39 : f32 to vector<16x1xf32>
    %143 = arith.divf %141, %142 : vector<16x1xf32>
    %cst_40 = arith.constant 9.99999996E-13 : f32
    %144 = vector.broadcast %cst_40 : f32 to vector<16x1xf32>
    %145 = arith.addf %143, %144 : vector<16x1xf32>
    %146 = math.rsqrt %145 : vector<16x1xf32>
    %147 = vector.broadcast %136 : vector<16x1xf32> to vector<16x32xf32>
    %148 = arith.subf %128, %147 : vector<16x32xf32>
    %149 = vector.broadcast %146 : vector<16x1xf32> to vector<16x32xf32>
    %150 = arith.mulf %148, %149 : vector<16x32xf32>
    %151 = vector.broadcast %130 : vector<1x32xf32> to vector<16x32xf32>
    %152 = arith.mulf %150, %151 : vector<16x32xf32>
    %153 = vector.broadcast %132 : vector<1x32xf32> to vector<16x32xf32>
    %154 = arith.addf %152, %153 : vector<16x32xf32>
    %155 = arith.truncf %154 : vector<16x32xf32> to vector<16x32xbf16>
    %c0_41 = arith.constant 0 : index
    %c0_42 = arith.constant 0 : index
    %c0_43 = arith.constant 0 : index
    %156 = vector.load %arg10[%c0_41, %c0_42, %c0_43] : memref<2x32x64xbf16, #tpu.memory_space<vmem>>, vector<1x32x64xbf16>
    %157 = vector.shape_cast %156 : vector<1x32x64xbf16> to vector<32x64xbf16>
    %cst_44 = arith.constant dense<0.000000e+00> : vector<16x64xf32>
    %158 = tpu.matmul %155, %157, %cst_44 {dimension_numbers = #tpu.dot_dimension_numbers<[1], [0], [0], [1], [0, 0, 1, 1], [], []>} : vector<16x32xbf16>, vector<32x64xbf16>, vector<16x64xf32> -> vector<16x64xf32>
    %c0_45 = arith.constant 0 : index
    %c0_46 = arith.constant 0 : index
    %c0_47 = arith.constant 0 : index
    %159 = vector.load %arg11[%c0_45, %c0_46, %c0_47] : memref<2x1x64xf32, #tpu.memory_space<vmem>>, vector<1x1x64xf32>
    %160 = vector.shape_cast %159 : vector<1x1x64xf32> to vector<1x64xf32>
    %161 = vector.broadcast %160 : vector<1x64xf32> to vector<16x64xf32>
    %162 = arith.addf %158, %161 : vector<16x64xf32>
    %163 = arith.mulf %162, %162 : vector<16x64xf32>
    %164 = arith.mulf %162, %163 : vector<16x64xf32>
    %cst_48 = arith.constant 4.471500e-02 : f32
    %165 = vector.broadcast %cst_48 : f32 to vector<16x64xf32>
    %166 = arith.mulf %165, %164 : vector<16x64xf32>
    %167 = arith.addf %162, %166 : vector<16x64xf32>
    %cst_49 = arith.constant 0.797884583 : f32
    %168 = vector.broadcast %cst_49 : f32 to vector<16x64xf32>
    %169 = arith.mulf %168, %167 : vector<16x64xf32>
    %170 = math.tanh %169 : vector<16x64xf32>
    %cst_50 = arith.constant 1.000000e+00 : f32
    %171 = vector.broadcast %cst_50 : f32 to vector<16x64xf32>
    %172 = arith.addf %171, %170 : vector<16x64xf32>
    %cst_51 = arith.constant 5.000000e-01 : f32
    %173 = vector.broadcast %cst_51 : f32 to vector<16x64xf32>
    %174 = arith.mulf %173, %172 : vector<16x64xf32>
    %175 = arith.mulf %162, %174 : vector<16x64xf32>
    %176 = arith.truncf %175 : vector<16x64xf32> to vector<16x64xbf16>
    %c0_52 = arith.constant 0 : index
    %c0_53 = arith.constant 0 : index
    %c0_54 = arith.constant 0 : index
    %177 = vector.load %arg12[%c0_52, %c0_53, %c0_54] : memref<2x64x32xbf16, #tpu.memory_space<vmem>>, vector<1x64x32xbf16>
    %178 = vector.shape_cast %177 : vector<1x64x32xbf16> to vector<64x32xbf16>
    %cst_55 = arith.constant dense<0.000000e+00> : vector<16x32xf32>
    %179 = tpu.matmul %176, %178, %cst_55 {dimension_numbers = #tpu.dot_dimension_numbers<[1], [0], [0], [1], [0, 0, 1, 1], [], []>} : vector<16x64xbf16>, vector<64x32xbf16>, vector<16x32xf32> -> vector<16x32xf32>
    %c0_56 = arith.constant 0 : index
    %c0_57 = arith.constant 0 : index
    %c0_58 = arith.constant 0 : index
    %180 = vector.load %arg13[%c0_56, %c0_57, %c0_58] : memref<2x1x32xf32, #tpu.memory_space<vmem>>, vector<1x1x32xf32>
    %181 = vector.shape_cast %180 : vector<1x1x32xf32> to vector<1x32xf32>
    %182 = vector.broadcast %181 : vector<1x32xf32> to vector<16x32xf32>
    %183 = arith.addf %179, %182 : vector<16x32xf32>
    %184 = arith.addf %154, %183 : vector<16x32xf32>
    %c0_59 = arith.constant 0 : index
    %c0_60 = arith.constant 0 : index
    %c0_61 = arith.constant 0 : index
    %185 = vector.load %arg14[%c0_59, %c0_60, %c0_61] : memref<2x1x32xf32, #tpu.memory_space<vmem>>, vector<1x1x32xf32>
    %186 = vector.shape_cast %185 : vector<1x1x32xf32> to vector<1x32xf32>
    %c0_62 = arith.constant 0 : index
    %c0_63 = arith.constant 0 : index
    %c0_64 = arith.constant 0 : index
    %187 = vector.load %arg15[%c0_62, %c0_63, %c0_64] : memref<2x1x32xf32, #tpu.memory_space<vmem>>, vector<1x1x32xf32>
    %188 = vector.shape_cast %187 : vector<1x1x32xf32> to vector<1x32xf32>
    %cst_65 = arith.constant dense<0.000000e+00> : vector<16xf32>
    %189 = vector.multi_reduction <add>, %184, %cst_65 [1] : vector<16x32xf32> to vector<16xf32>
    %190 = vector.shape_cast %189 : vector<16xf32> to vector<16x1xf32>
    %cst_66 = arith.constant 3.200000e+01 : f32
    %191 = vector.broadcast %cst_66 : f32 to vector<16x1xf32>
    %192 = arith.divf %190, %191 : vector<16x1xf32>
    %193 = vector.broadcast %192 : vector<16x1xf32> to vector<16x32xf32>
    %194 = arith.subf %184, %193 : vector<16x32xf32>
    %195 = arith.mulf %194, %194 : vector<16x32xf32>
    %cst_67 = arith.constant dense<0.000000e+00> : vector<16xf32>
    %196 = vector.multi_reduction <add>, %195, %cst_67 [1] : vector<16x32xf32> to vector<16xf32>
    %197 = vector.shape_cast %196 : vector<16xf32> to vector<16x1xf32>
    %cst_68 = arith.constant 3.200000e+01 : f32
    %198 = vector.broadcast %cst_68 : f32 to vector<16x1xf32>
    %199 = arith.divf %197, %198 : vector<16x1xf32>
    %cst_69 = arith.constant 9.99999996E-13 : f32
    %200 = vector.broadcast %cst_69 : f32 to vector<16x1xf32>
    %201 = arith.addf %199, %200 : vector<16x1xf32>
    %202 = math.rsqrt %201 : vector<16x1xf32>
    %203 = vector.broadcast %192 : vector<16x1xf32> to vector<16x32xf32>
    %204 = arith.subf %184, %203 : vector<16x32xf32>
    %205 = vector.broadcast %202 : vector<16x1xf32> to vector<16x32xf32>
    %206 = arith.mulf %204, %205 : vector<16x32xf32>
    %207 = vector.broadcast %186 : vector<1x32xf32> to vector<16x32xf32>
    %208 = arith.mulf %206, %207 : vector<16x32xf32>
    %209 = vector.broadcast %188 : vector<1x32xf32> to vector<16x32xf32>
    %210 = arith.addf %208, %209 : vector<16x32xf32>
    %211 = arith.truncf %210 : vector<16x32xf32> to vector<16x32xbf16>
    %c1 = arith.constant 1 : index
    %c0_70 = arith.constant 0 : index
    %c0_71 = arith.constant 0 : index
    %212 = vector.load %arg4[%c1, %c0_70, %c0_71] : memref<2x32x96xbf16, #tpu.memory_space<vmem>>, vector<1x32x96xbf16>
    %213 = vector.shape_cast %212 : vector<1x32x96xbf16> to vector<32x96xbf16>
    %cst_72 = arith.constant dense<0.000000e+00> : vector<16x96xf32>
    %214 = tpu.matmul %211, %213, %cst_72 {dimension_numbers = #tpu.dot_dimension_numbers<[1], [0], [0], [1], [0, 0, 1, 1], [], []>} : vector<16x32xbf16>, vector<32x96xbf16>, vector<16x96xf32> -> vector<16x96xf32>
    %c1_73 = arith.constant 1 : index
    %c0_74 = arith.constant 0 : index
    %c0_75 = arith.constant 0 : index
    %215 = vector.load %arg5[%c1_73, %c0_74, %c0_75] : memref<2x1x96xf32, #tpu.memory_space<vmem>>, vector<1x1x96xf32>
    %216 = vector.shape_cast %215 : vector<1x1x96xf32> to vector<1x96xf32>
    %217 = vector.broadcast %216 : vector<1x96xf32> to vector<16x96xf32>
    %218 = arith.addf %214, %217 : vector<16x96xf32>
    %219 = arith.truncf %218 : vector<16x96xf32> to vector<16x96xbf16>
    %220 = vector.extract_strided_slice %219 {offsets = [0, 0], sizes = [8, 8], strides = [1, 1]} : vector<16x96xbf16> to vector<8x8xbf16>
    %221 = vector.extract_strided_slice %219 {offsets = [0, 8], sizes = [8, 8], strides = [1, 1]} : vector<16x96xbf16> to vector<8x8xbf16>
    %222 = vector.extract_strided_slice %219 {offsets = [0, 16], sizes = [8, 8], strides = [1, 1]} : vector<16x96xbf16> to vector<8x8xbf16>
    %223 = vector.extract_strided_slice %219 {offsets = [0, 24], sizes = [8, 8], strides = [1, 1]} : vector<16x96xbf16> to vector<8x8xbf16>
    %224 = vector.extract_strided_slice %219 {offsets = [8, 0], sizes = [8, 8], strides = [1, 1]} : vector<16x96xbf16> to vector<8x8xbf16>
    %225 = vector.extract_strided_slice %219 {offsets = [8, 8], sizes = [8, 8], strides = [1, 1]} : vector<16x96xbf16> to vector<8x8xbf16>
    %226 = vector.extract_strided_slice %219 {offsets = [8, 16], sizes = [8, 8], strides = [1, 1]} : vector<16x96xbf16> to vector<8x8xbf16>
    %227 = vector.extract_strided_slice %219 {offsets = [8, 24], sizes = [8, 8], strides = [1, 1]} : vector<16x96xbf16> to vector<8x8xbf16>
    %228 = vector.shape_cast %220 : vector<8x8xbf16> to vector<1x8x8xbf16>
    %229 = vector.shape_cast %221 : vector<8x8xbf16> to vector<1x8x8xbf16>
    %230 = vector.shape_cast %222 : vector<8x8xbf16> to vector<1x8x8xbf16>
    %231 = vector.shape_cast %223 : vector<8x8xbf16> to vector<1x8x8xbf16>
    %232 = vector.shape_cast %224 : vector<8x8xbf16> to vector<1x8x8xbf16>
    %233 = vector.shape_cast %225 : vector<8x8xbf16> to vector<1x8x8xbf16>
    %234 = vector.shape_cast %226 : vector<8x8xbf16> to vector<1x8x8xbf16>
    %235 = vector.shape_cast %227 : vector<8x8xbf16> to vector<1x8x8xbf16>
    %236 = tpu.concatenate %228, %229, %230, %231, %232, %233, %234, %235 in 0 : vector<1x8x8xbf16>, vector<1x8x8xbf16>, vector<1x8x8xbf16>, vector<1x8x8xbf16>, vector<1x8x8xbf16>, vector<1x8x8xbf16>, vector<1x8x8xbf16>, vector<1x8x8xbf16> -> vector<8x8x8xbf16>
    %237 = vector.extract_strided_slice %219 {offsets = [0, 32], sizes = [8, 8], strides = [1, 1]} : vector<16x96xbf16> to vector<8x8xbf16>
    %238 = vector.extract_strided_slice %219 {offsets = [0, 40], sizes = [8, 8], strides = [1, 1]} : vector<16x96xbf16> to vector<8x8xbf16>
    %239 = vector.extract_strided_slice %219 {offsets = [0, 48], sizes = [8, 8], strides = [1, 1]} : vector<16x96xbf16> to vector<8x8xbf16>
    %240 = vector.extract_strided_slice %219 {offsets = [0, 56], sizes = [8, 8], strides = [1, 1]} : vector<16x96xbf16> to vector<8x8xbf16>
    %241 = vector.extract_strided_slice %219 {offsets = [8, 32], sizes = [8, 8], strides = [1, 1]} : vector<16x96xbf16> to vector<8x8xbf16>
    %242 = vector.extract_strided_slice %219 {offsets = [8, 40], sizes = [8, 8], strides = [1, 1]} : vector<16x96xbf16> to vector<8x8xbf16>
    %243 = vector.extract_strided_slice %219 {offsets = [8, 48], sizes = [8, 8], strides = [1, 1]} : vector<16x96xbf16> to vector<8x8xbf16>
    %244 = vector.extract_strided_slice %219 {offsets = [8, 56], sizes = [8, 8], strides = [1, 1]} : vector<16x96xbf16> to vector<8x8xbf16>
    %245 = vector.shape_cast %237 : vector<8x8xbf16> to vector<1x8x8xbf16>
    %246 = vector.shape_cast %238 : vector<8x8xbf16> to vector<1x8x8xbf16>
    %247 = vector.shape_cast %239 : vector<8x8xbf16> to vector<1x8x8xbf16>
    %248 = vector.shape_cast %240 : vector<8x8xbf16> to vector<1x8x8xbf16>
    %249 = vector.shape_cast %241 : vector<8x8xbf16> to vector<1x8x8xbf16>
    %250 = vector.shape_cast %242 : vector<8x8xbf16> to vector<1x8x8xbf16>
    %251 = vector.shape_cast %243 : vector<8x8xbf16> to vector<1x8x8xbf16>
    %252 = vector.shape_cast %244 : vector<8x8xbf16> to vector<1x8x8xbf16>
    %253 = tpu.concatenate %245, %246, %247, %248, %249, %250, %251, %252 in 0 : vector<1x8x8xbf16>, vector<1x8x8xbf16>, vector<1x8x8xbf16>, vector<1x8x8xbf16>, vector<1x8x8xbf16>, vector<1x8x8xbf16>, vector<1x8x8xbf16>, vector<1x8x8xbf16> -> vector<8x8x8xbf16>
    %254 = vector.extract_strided_slice %219 {offsets = [0, 64], sizes = [8, 8], strides = [1, 1]} : vector<16x96xbf16> to vector<8x8xbf16>
    %255 = vector.extract_strided_slice %219 {offsets = [0, 72], sizes = [8, 8], strides = [1, 1]} : vector<16x96xbf16> to vector<8x8xbf16>
    %256 = vector.extract_strided_slice %219 {offsets = [0, 80], sizes = [8, 8], strides = [1, 1]} : vector<16x96xbf16> to vector<8x8xbf16>
    %257 = vector.extract_strided_slice %219 {offsets = [0, 88], sizes = [8, 8], strides = [1, 1]} : vector<16x96xbf16> to vector<8x8xbf16>
    %258 = vector.extract_strided_slice %219 {offsets = [8, 64], sizes = [8, 8], strides = [1, 1]} : vector<16x96xbf16> to vector<8x8xbf16>
    %259 = vector.extract_strided_slice %219 {offsets = [8, 72], sizes = [8, 8], strides = [1, 1]} : vector<16x96xbf16> to vector<8x8xbf16>
    %260 = vector.extract_strided_slice %219 {offsets = [8, 80], sizes = [8, 8], strides = [1, 1]} : vector<16x96xbf16> to vector<8x8xbf16>
    %261 = vector.extract_strided_slice %219 {offsets = [8, 88], sizes = [8, 8], strides = [1, 1]} : vector<16x96xbf16> to vector<8x8xbf16>
    %262 = vector.shape_cast %254 : vector<8x8xbf16> to vector<1x8x8xbf16>
    %263 = vector.shape_cast %255 : vector<8x8xbf16> to vector<1x8x8xbf16>
    %264 = vector.shape_cast %256 : vector<8x8xbf16> to vector<1x8x8xbf16>
    %265 = vector.shape_cast %257 : vector<8x8xbf16> to vector<1x8x8xbf16>
    %266 = vector.shape_cast %258 : vector<8x8xbf16> to vector<1x8x8xbf16>
    %267 = vector.shape_cast %259 : vector<8x8xbf16> to vector<1x8x8xbf16>
    %268 = vector.shape_cast %260 : vector<8x8xbf16> to vector<1x8x8xbf16>
    %269 = vector.shape_cast %261 : vector<8x8xbf16> to vector<1x8x8xbf16>
    %270 = tpu.concatenate %262, %263, %264, %265, %266, %267, %268, %269 in 0 : vector<1x8x8xbf16>, vector<1x8x8xbf16>, vector<1x8x8xbf16>, vector<1x8x8xbf16>, vector<1x8x8xbf16>, vector<1x8x8xbf16>, vector<1x8x8xbf16>, vector<1x8x8xbf16> -> vector<8x8x8xbf16>
    "tpu.trace_start"() <{level = 10 : i32, message = "nqd,nkd->nqk"}> : () -> ()
    %cst_76 = arith.constant dense<0.000000e+00> : vector<8x8x8xf32>
    %271 = tpu.matmul %236, %253, %cst_76 {dimension_numbers = #tpu.dot_dimension_numbers<[2], [2], [1], [1], [0, 0, 0, 1, 1, 1], [0], [0]>} : vector<8x8x8xbf16>, vector<8x8x8xbf16>, vector<8x8x8xf32> -> vector<8x8x8xf32>
    "tpu.trace_stop"() : () -> ()
    %272 = vector.broadcast %25 : vector<8x1x8xf32> to vector<8x8x8xf32>
    %273 = arith.addf %271, %272 : vector<8x8x8xf32>
    %cst_77 = arith.constant dense<0xFF800000> : vector<8x8xf32>
    %274 = vector.multi_reduction <maximumf>, %273, %cst_77 [2] : vector<8x8x8xf32> to vector<8x8xf32>
    %275 = vector.shape_cast %274 : vector<8x8xf32> to vector<8x8x1xf32>
    %276 = vector.broadcast %275 : vector<8x8x1xf32> to vector<8x8x8xf32>
    %277 = arith.subf %273, %276 : vector<8x8x8xf32>
    %278 = math.exp %277 : vector<8x8x8xf32>
    %cst_78 = arith.constant dense<0.000000e+00> : vector<8x8xf32>
    %279 = vector.multi_reduction <add>, %278, %cst_78 [2] : vector<8x8x8xf32> to vector<8x8xf32>
    %280 = vector.shape_cast %279 : vector<8x8xf32> to vector<8x8x1xf32>
    %281 = tpu.reciprocal %280 {approx = true} : vector<8x8x1xf32> -> vector<8x8x1xf32>
    %282 = vector.broadcast %281 : vector<8x8x1xf32> to vector<8x8x8xf32>
    %283 = arith.mulf %278, %282 : vector<8x8x8xf32>
    %284 = arith.truncf %283 : vector<8x8x8xf32> to vector<8x8x8xbf16>
    "tpu.trace_start"() <{level = 10 : i32, message = "nqk,nkd->nqd"}> : () -> ()
    %cst_79 = arith.constant dense<0.000000e+00> : vector<8x8x8xf32>
    %285 = tpu.matmul %284, %270, %cst_79 {dimension_numbers = #tpu.dot_dimension_numbers<[2], [1], [1], [2], [0, 0, 0, 1, 1, 2], [0], [0]>} : vector<8x8x8xbf16>, vector<8x8x8xbf16>, vector<8x8x8xf32> -> vector<8x8x8xf32>
    "tpu.trace_stop"() : () -> ()
    %286 = arith.truncf %285 : vector<8x8x8xf32> to vector<8x8x8xbf16>
    %287 = vector.extract_strided_slice %286 {offsets = [0, 0, 0], sizes = [1, 8, 8], strides = [1, 1, 1]} : vector<8x8x8xbf16> to vector<1x8x8xbf16>
    %288 = vector.shape_cast %287 : vector<1x8x8xbf16> to vector<8x8xbf16>
    %289 = vector.extract_strided_slice %286 {offsets = [1, 0, 0], sizes = [1, 8, 8], strides = [1, 1, 1]} : vector<8x8x8xbf16> to vector<1x8x8xbf16>
    %290 = vector.shape_cast %289 : vector<1x8x8xbf16> to vector<8x8xbf16>
    %291 = vector.extract_strided_slice %286 {offsets = [2, 0, 0], sizes = [1, 8, 8], strides = [1, 1, 1]} : vector<8x8x8xbf16> to vector<1x8x8xbf16>
    %292 = vector.shape_cast %291 : vector<1x8x8xbf16> to vector<8x8xbf16>
    %293 = vector.extract_strided_slice %286 {offsets = [3, 0, 0], sizes = [1, 8, 8], strides = [1, 1, 1]} : vector<8x8x8xbf16> to vector<1x8x8xbf16>
    %294 = vector.shape_cast %293 : vector<1x8x8xbf16> to vector<8x8xbf16>
    %295 = tpu.concatenate %288, %290, %292, %294 in 1 : vector<8x8xbf16>, vector<8x8xbf16>, vector<8x8xbf16>, vector<8x8xbf16> -> vector<8x32xbf16>
    %296 = vector.extract_strided_slice %286 {offsets = [4, 0, 0], sizes = [1, 8, 8], strides = [1, 1, 1]} : vector<8x8x8xbf16> to vector<1x8x8xbf16>
    %297 = vector.shape_cast %296 : vector<1x8x8xbf16> to vector<8x8xbf16>
    %298 = vector.extract_strided_slice %286 {offsets = [5, 0, 0], sizes = [1, 8, 8], strides = [1, 1, 1]} : vector<8x8x8xbf16> to vector<1x8x8xbf16>
    %299 = vector.shape_cast %298 : vector<1x8x8xbf16> to vector<8x8xbf16>
    %300 = vector.extract_strided_slice %286 {offsets = [6, 0, 0], sizes = [1, 8, 8], strides = [1, 1, 1]} : vector<8x8x8xbf16> to vector<1x8x8xbf16>
    %301 = vector.shape_cast %300 : vector<1x8x8xbf16> to vector<8x8xbf16>
    %302 = vector.extract_strided_slice %286 {offsets = [7, 0, 0], sizes = [1, 8, 8], strides = [1, 1, 1]} : vector<8x8x8xbf16> to vector<1x8x8xbf16>
    %303 = vector.shape_cast %302 : vector<1x8x8xbf16> to vector<8x8xbf16>
    %304 = tpu.concatenate %297, %299, %301, %303 in 1 : vector<8x8xbf16>, vector<8x8xbf16>, vector<8x8xbf16>, vector<8x8xbf16> -> vector<8x32xbf16>
    %305 = tpu.concatenate %295, %304 in 0 : vector<8x32xbf16>, vector<8x32xbf16> -> vector<16x32xbf16>
    %c1_80 = arith.constant 1 : index
    %c0_81 = arith.constant 0 : index
    %c0_82 = arith.constant 0 : index
    %306 = vector.load %arg6[%c1_80, %c0_81, %c0_82] : memref<2x32x32xbf16, #tpu.memory_space<vmem>>, vector<1x32x32xbf16>
    %307 = vector.shape_cast %306 : vector<1x32x32xbf16> to vector<32x32xbf16>
    %cst_83 = arith.constant dense<0.000000e+00> : vector<16x32xf32>
    %308 = tpu.matmul %305, %307, %cst_83 {dimension_numbers = #tpu.dot_dimension_numbers<[1], [0], [0], [1], [0, 0, 1, 1], [], []>} : vector<16x32xbf16>, vector<32x32xbf16>, vector<16x32xf32> -> vector<16x32xf32>
    %c1_84 = arith.constant 1 : index
    %c0_85 = arith.constant 0 : index
    %c0_86 = arith.constant 0 : index
    %309 = vector.load %arg7[%c1_84, %c0_85, %c0_86] : memref<2x1x32xf32, #tpu.memory_space<vmem>>, vector<1x1x32xf32>
    %310 = vector.shape_cast %309 : vector<1x1x32xf32> to vector<1x32xf32>
    %311 = vector.broadcast %310 : vector<1x32xf32> to vector<16x32xf32>
    %312 = arith.addf %308, %311 : vector<16x32xf32>
    %313 = arith.addf %210, %312 : vector<16x32xf32>
    %c1_87 = arith.constant 1 : index
    %c0_88 = arith.constant 0 : index
    %c0_89 = arith.constant 0 : index
    %314 = vector.load %arg8[%c1_87, %c0_88, %c0_89] : memref<2x1x32xf32, #tpu.memory_space<vmem>>, vector<1x1x32xf32>
    %315 = vector.shape_cast %314 : vector<1x1x32xf32> to vector<1x32xf32>
    %c1_90 = arith.constant 1 : index
    %c0_91 = arith.constant 0 : index
    %c0_92 = arith.constant 0 : index
    %316 = vector.load %arg9[%c1_90, %c0_91, %c0_92] : memref<2x1x32xf32, #tpu.memory_space<vmem>>, vector<1x1x32xf32>
    %317 = vector.shape_cast %316 : vector<1x1x32xf32> to vector<1x32xf32>
    %cst_93 = arith.constant dense<0.000000e+00> : vector<16xf32>
    %318 = vector.multi_reduction <add>, %313, %cst_93 [1] : vector<16x32xf32> to vector<16xf32>
    %319 = vector.shape_cast %318 : vector<16xf32> to vector<16x1xf32>
    %cst_94 = arith.constant 3.200000e+01 : f32
    %320 = vector.broadcast %cst_94 : f32 to vector<16x1xf32>
    %321 = arith.divf %319, %320 : vector<16x1xf32>
    %322 = vector.broadcast %321 : vector<16x1xf32> to vector<16x32xf32>
    %323 = arith.subf %313, %322 : vector<16x32xf32>
    %324 = arith.mulf %323, %323 : vector<16x32xf32>
    %cst_95 = arith.constant dense<0.000000e+00> : vector<16xf32>
    %325 = vector.multi_reduction <add>, %324, %cst_95 [1] : vector<16x32xf32> to vector<16xf32>
    %326 = vector.shape_cast %325 : vector<16xf32> to vector<16x1xf32>
    %cst_96 = arith.constant 3.200000e+01 : f32
    %327 = vector.broadcast %cst_96 : f32 to vector<16x1xf32>
    %328 = arith.divf %326, %327 : vector<16x1xf32>
    %cst_97 = arith.constant 9.99999996E-13 : f32
    %329 = vector.broadcast %cst_97 : f32 to vector<16x1xf32>
    %330 = arith.addf %328, %329 : vector<16x1xf32>
    %331 = math.rsqrt %330 : vector<16x1xf32>
    %332 = vector.broadcast %321 : vector<16x1xf32> to vector<16x32xf32>
    %333 = arith.subf %313, %332 : vector<16x32xf32>
    %334 = vector.broadcast %331 : vector<16x1xf32> to vector<16x32xf32>
    %335 = arith.mulf %333, %334 : vector<16x32xf32>
    %336 = vector.broadcast %315 : vector<1x32xf32> to vector<16x32xf32>
    %337 = arith.mulf %335, %336 : vector<16x32xf32>
    %338 = vector.broadcast %317 : vector<1x32xf32> to vector<16x32xf32>
    %339 = arith.addf %337, %338 : vector<16x32xf32>
    %340 = arith.truncf %339 : vector<16x32xf32> to vector<16x32xbf16>
    %c1_98 = arith.constant 1 : index
    %c0_99 = arith.constant 0 : index
    %c0_100 = arith.constant 0 : index
    %341 = vector.load %arg10[%c1_98, %c0_99, %c0_100] : memref<2x32x64xbf16, #tpu.memory_space<vmem>>, vector<1x32x64xbf16>
    %342 = vector.shape_cast %341 : vector<1x32x64xbf16> to vector<32x64xbf16>
    %cst_101 = arith.constant dense<0.000000e+00> : vector<16x64xf32>
    %343 = tpu.matmul %340, %342, %cst_101 {dimension_numbers = #tpu.dot_dimension_numbers<[1], [0], [0], [1], [0, 0, 1, 1], [], []>} : vector<16x32xbf16>, vector<32x64xbf16>, vector<16x64xf32> -> vector<16x64xf32>
    %c1_102 = arith.constant 1 : index
    %c0_103 = arith.constant 0 : index
    %c0_104 = arith.constant 0 : index
    %344 = vector.load %arg11[%c1_102, %c0_103, %c0_104] : memref<2x1x64xf32, #tpu.memory_space<vmem>>, vector<1x1x64xf32>
    %345 = vector.shape_cast %344 : vector<1x1x64xf32> to vector<1x64xf32>
    %346 = vector.broadcast %345 : vector<1x64xf32> to vector<16x64xf32>
    %347 = arith.addf %343, %346 : vector<16x64xf32>
    %348 = arith.mulf %347, %347 : vector<16x64xf32>
    %349 = arith.mulf %347, %348 : vector<16x64xf32>
    %cst_105 = arith.constant 4.471500e-02 : f32
    %350 = vector.broadcast %cst_105 : f32 to vector<16x64xf32>
    %351 = arith.mulf %350, %349 : vector<16x64xf32>
    %352 = arith.addf %347, %351 : vector<16x64xf32>
    %cst_106 = arith.constant 0.797884583 : f32
    %353 = vector.broadcast %cst_106 : f32 to vector<16x64xf32>
    %354 = arith.mulf %353, %352 : vector<16x64xf32>
    %355 = math.tanh %354 : vector<16x64xf32>
    %cst_107 = arith.constant 1.000000e+00 : f32
    %356 = vector.broadcast %cst_107 : f32 to vector<16x64xf32>
    %357 = arith.addf %356, %355 : vector<16x64xf32>
    %cst_108 = arith.constant 5.000000e-01 : f32
    %358 = vector.broadcast %cst_108 : f32 to vector<16x64xf32>
    %359 = arith.mulf %358, %357 : vector<16x64xf32>
    %360 = arith.mulf %347, %359 : vector<16x64xf32>
    %361 = arith.truncf %360 : vector<16x64xf32> to vector<16x64xbf16>
    %c1_109 = arith.constant 1 : index
    %c0_110 = arith.constant 0 : index
    %c0_111 = arith.constant 0 : index
    %362 = vector.load %arg12[%c1_109, %c0_110, %c0_111] : memref<2x64x32xbf16, #tpu.memory_space<vmem>>, vector<1x64x32xbf16>
    %363 = vector.shape_cast %362 : vector<1x64x32xbf16> to vector<64x32xbf16>
    %cst_112 = arith.constant dense<0.000000e+00> : vector<16x32xf32>
    %364 = tpu.matmul %361, %363, %cst_112 {dimension_numbers = #tpu.dot_dimension_numbers<[1], [0], [0], [1], [0, 0, 1, 1], [], []>} : vector<16x64xbf16>, vector<64x32xbf16>, vector<16x32xf32> -> vector<16x32xf32>
    %c1_113 = arith.constant 1 : index
    %c0_114 = arith.constant 0 : index
    %c0_115 = arith.constant 0 : index
    %365 = vector.load %arg13[%c1_113, %c0_114, %c0_115] : memref<2x1x32xf32, #tpu.memory_space<vmem>>, vector<1x1x32xf32>
    %366 = vector.shape_cast %365 : vector<1x1x32xf32> to vector<1x32xf32>
    %367 = vector.broadcast %366 : vector<1x32xf32> to vector<16x32xf32>
    %368 = arith.addf %364, %367 : vector<16x32xf32>
    %369 = arith.addf %339, %368 : vector<16x32xf32>
    %c1_116 = arith.constant 1 : index
    %c0_117 = arith.constant 0 : index
    %c0_118 = arith.constant 0 : index
    %370 = vector.load %arg14[%c1_116, %c0_117, %c0_118] : memref<2x1x32xf32, #tpu.memory_space<vmem>>, vector<1x1x32xf32>
    %371 = vector.shape_cast %370 : vector<1x1x32xf32> to vector<1x32xf32>
    %c1_119 = arith.constant 1 : index
    %c0_120 = arith.constant 0 : index
    %c0_121 = arith.constant 0 : index
    %372 = vector.load %arg15[%c1_119, %c0_120, %c0_121] : memref<2x1x32xf32, #tpu.memory_space<vmem>>, vector<1x1x32xf32>
    %373 = vector.shape_cast %372 : vector<1x1x32xf32> to vector<1x32xf32>
    %cst_122 = arith.constant dense<0.000000e+00> : vector<16xf32>
    %374 = vector.multi_reduction <add>, %369, %cst_122 [1] : vector<16x32xf32> to vector<16xf32>
    %375 = vector.shape_cast %374 : vector<16xf32> to vector<16x1xf32>
    %cst_123 = arith.constant 3.200000e+01 : f32
    %376 = vector.broadcast %cst_123 : f32 to vector<16x1xf32>
    %377 = arith.divf %375, %376 : vector<16x1xf32>
    %378 = vector.broadcast %377 : vector<16x1xf32> to vector<16x32xf32>
    %379 = arith.subf %369, %378 : vector<16x32xf32>
    %380 = arith.mulf %379, %379 : vector<16x32xf32>
    %cst_124 = arith.constant dense<0.000000e+00> : vector<16xf32>
    %381 = vector.multi_reduction <add>, %380, %cst_124 [1] : vector<16x32xf32> to vector<16xf32>
    %382 = vector.shape_cast %381 : vector<16xf32> to vector<16x1xf32>
    %cst_125 = arith.constant 3.200000e+01 : f32
    %383 = vector.broadcast %cst_125 : f32 to vector<16x1xf32>
    %384 = arith.divf %382, %383 : vector<16x1xf32>
    %cst_126 = arith.constant 9.99999996E-13 : f32
    %385 = vector.broadcast %cst_126 : f32 to vector<16x1xf32>
    %386 = arith.addf %384, %385 : vector<16x1xf32>
    %387 = math.rsqrt %386 : vector<16x1xf32>
    %388 = vector.broadcast %377 : vector<16x1xf32> to vector<16x32xf32>
    %389 = arith.subf %369, %388 : vector<16x32xf32>
    %390 = vector.broadcast %387 : vector<16x1xf32> to vector<16x32xf32>
    %391 = arith.mulf %389, %390 : vector<16x32xf32>
    %392 = vector.broadcast %371 : vector<1x32xf32> to vector<16x32xf32>
    %393 = arith.mulf %391, %392 : vector<16x32xf32>
    %394 = vector.broadcast %373 : vector<1x32xf32> to vector<16x32xf32>
    %395 = arith.addf %393, %394 : vector<16x32xf32>
    %396 = vector.extract_strided_slice %395 {offsets = [0, 0], sizes = [1, 32], strides = [1, 1]} : vector<16x32xf32> to vector<1x32xf32>
    %397 = vector.extract_strided_slice %395 {offsets = [8, 0], sizes = [1, 32], strides = [1, 1]} : vector<16x32xf32> to vector<1x32xf32>
    %398 = tpu.concatenate %396, %397 in 0 : vector<1x32xf32>, vector<1x32xf32> -> vector<2x32xf32>
    %399 = arith.truncf %398 : vector<2x32xf32> to vector<2x32xbf16>
    %c0_127 = arith.constant 0 : index
    %c0_128 = arith.constant 0 : index
    %400 = vector.load %arg16[%c0_127, %c0_128] : memref<32x3xbf16, #tpu.memory_space<vmem>>, vector<32x3xbf16>
    %cst_129 = arith.constant dense<0.000000e+00> : vector<2x3xf32>
    %401 = tpu.matmul %399, %400, %cst_129 {dimension_numbers = #tpu.dot_dimension_numbers<[1], [0], [0], [1], [0, 0, 1, 1], [], []>} : vector<2x32xbf16>, vector<32x3xbf16>, vector<2x3xf32> -> vector<2x3xf32>
    %c0_130 = arith.constant 0 : index
    %c0_131 = arith.constant 0 : index
    %402 = vector.load %arg17[%c0_130, %c0_131] : memref<1x3xf32, #tpu.memory_space<vmem>>, vector<1x3xf32>
    %403 = vector.broadcast %402 : vector<1x3xf32> to vector<2x3xf32>
    %404 = arith.addf %401, %403 : vector<2x3xf32>
    %c0_132 = arith.constant 0 : index
    %c0_133 = arith.constant 0 : index
    %405 = vector.load %arg18[%c0_132, %c0_133] : memref<2x3xf32, #tpu.memory_space<vmem>>, vector<2x3xf32>
    tpu.vector_store %arg18[%c0_132, %c0_133], %404 {strides = array<i32>} : memref<2x3xf32, #tpu.memory_space<vmem>>, vector<2x3xf32>,
    return
  }
}

</mosaic_0001>

<bundles_post_ra>
// kernel: bert_with_linear_classifier_forward.1
= control target key start
LH: loop header
LB: loop body
LE: loop exit
PB: predicated region body
PF: predicated region fallthrough
CT: control target
= control target key end

     0   :  { %s2878_s0 = inlined_call_operand.vmem [shape: f32[16,32], index: 0, kind: input, shape index: {}]   ;;  %s2879_s1 = inlined_call_operand.vmem [shape: f32[8,1,8], index: 1, kind: input, shape index: {}]   ;;  %s2880_s2 = inlined_call_operand.vmem [shape: f32[1,32], index: 2, kind: input, shape index: {}]   ;;  %s2881_s3 = inlined_call_operand.vmem [shape: f32[1,32], index: 3, kind: input, shape index: {}]   ;;  %s2882_s4 = inlined_call_operand.vmem [shape: bf16[2,32,96], index: 4, kind: input, shape index: {}]   ;;  %s2883_s5 = inlined_call_operand.vmem [shape: f32[2,1,96], index: 5, kind: input, shape index: {}]   ;;  %s2884_s6 = inlined_call_operand.vmem [shape: bf16[2,32,32], index: 6, kind: input, shape index: {}]   ;;  %s2885_s7 = inlined_call_operand.vmem [shape: f32[2,1,32], index: 7, kind: input, shape index: {}]   ;;  %s2886_s8 = inlined_call_operand.vmem [shape: f32[2,1,32], index: 8, kind: input, shape index: {}]   ;;  %s2887_s9 = inlined_call_operand.vmem [shape: f32[2,1,32], index: 9, kind: input, shape index: {}]   ;;  %s2888_s10 = inlined_call_operand.vmem [shape: bf16[2,32,64], index: 10, kind: input, shape index: {}]   ;;  %s2889_s11 = inlined_call_operand.vmem [shape: f32[2,1,64], index: 11, kind: input, shape index: {}]   ;;  %s2890_s12 = inlined_call_operand.vmem [shape: bf16[2,64,32], index: 12, kind: input, shape index: {}]   ;;  %s2891_s13 = inlined_call_operand.vmem [shape: f32[2,1,32], index: 13, kind: input, shape index: {}]   ;;  %s2892_s14 = inlined_call_operand.vmem [shape: f32[2,1,32], index: 14, kind: input, shape index: {}]   ;;  %s2893_s15 = inlined_call_operand.vmem [shape: f32[2,1,32], index: 15, kind: input, shape index: {}]   ;;  %s2894_s16 = inlined_call_operand.vmem [shape: bf16[32,3], index: 16, kind: input, shape index: {}]   ;;  %s2895_s17 = inlined_call_operand.vmem [shape: f32[1,3], index: 17, kind: input, shape index: {}]   ;;  %s2896_s18 = inlined_call_operand.hbm [shape: f32[2,3], index: 18, kind: output, shape index: {}]  }
   0x1   :  { %2905 = sst [smem:[#allocation5_spill]] %s2878_s0 }
   0x2   :  { %2906 = sst [smem:[#allocation6_spill]] %s2879_s1 }
   0x3   :  { %2907 = sst [smem:[#allocation7_spill]] %s2880_s2 }
   0x4   :  { %s2908_s29 = sld [smem:[#allocation5_spill]]  ;;  %vm65_vm0 = vcmask 261120  }
   0xa   :  { %v61_v0 = vld [vmem:[%s2908_s29] sm:$0xff]  ;;  %v62_v1 = vld [vmem:[%s2908_s29 + $0x8] sm:$0xff] }
   0xb   :  { %v66_v2 = vsel %vm65_vm0, %v61_v0, 0.0  ;;  %v69_v3 = vsel %vm65_vm0, %v62_v1, 0.0 }
   0xc   :  { %67 = vadd.xlane.f32.xlu0 %v66_v2 }
  0x14   :  { %70 = vadd.xlane.f32.xlu0 %v69_v3 }
  0x15   :  { %23 = vsyncpa [#allocation3], 0  ;;  %v2213_v4 = vmov 32.0   ;;  %v2034_v21 = vld [vmem:[%s2882_s4 + $0x8] sm:$0xff]  ;;  %v2033_v23 = vld [vmem:[%s2882_s4] sm:$0xff]  ;;  %s2909_s23 = sld [smem:[#allocation7_spill]] }
  0x16   :  { %2092 = vrcp.f32 %v2213_v4  ;;  %165 = vmatpush.bf16.msra.mxu0 %v2034_v21  ;;  %v2066_v47 = vld [vmem:[%s2881_s3] ss:$0 sm:$0xff]  ;;  %s2214_s28 = smov 104   ;;  %s2215_s3 = smov 120   ;;  %vm217_vm8 = vcmask 64512   ;;  %vm499_vm9 = vcmask 1043456  }
  0x17   :  { %v2067_v52 = vld [vmem:[%s2883_s5] ss:$0 sm:$0xff]  ;;  %s2216_s29 = smov 112   ;;  %s2217_s30 = smov 96   ;;  %vm689_vm10 = vcmask 130048   ;;  %vm692_vm11 = vcmask 195584  }
  0x18   :  { %s2910_s1 = sld [smem:[#allocation6_spill]]  ;;  %s2218_s2 = smov 64  }
  0x19   :  { %s2899_s24 = smov 16   ;;  %s2901_s25 = smov 24  }
  0x1a   :  { %166 = vmatpush.bf16.msra.mxu0 %v2033_v23  ;;  %s2222_s0 = smov [#allocation2]  }
  0x1b   :  { %v2065_v42 = vld [vmem:[%s2909_s23] ss:$0 sm:$0xff]  ;;  %s2903_s23 = smov 8  }
  0x1c   :  { %v2093_v5 = vpop.eup %2092 }
  0x1d   :  { %v73_v6 = vmul.f32 32.0, %v2093_v5  ;;  %vm77_vm1 = vweird.f32 %v2093_v5 }
  0x1f   :  { %v74_v7 = vsub.f32 1.0, %v73_v6 }
  0x21   :  { %v75_v8 = vmul.f32 %v2093_v5, %v74_v7 }
  0x23   :  { %v76_v9 = vadd.f32 %v2093_v5, %v75_v8 }
  0x25   :  { %v2326_v10 = vsel %vm77_vm1, %v2093_v5, %v76_v9 }
  0x7f   :  { %v68_v11 = vpop.xlane.xlu0 %67 }
  0x80   :  { %v79_v12 = vmul.f32 %v2326_v10, %v68_v11 }
  0x82   :  { %v81_v13 = vsub.f32 %v61_v0, %v79_v12 }
  0x84   :  { %v83_v14 = vmul.f32 %v81_v13, %v81_v13 }
  0x86   :  { %v85_v15 = vsel %vm65_vm0, %v83_v14, 0.0 }
  0x87   :  { %86 = vadd.xlane.f32.xlu1 %v85_v15  ;;  %v71_v16 = vpop.xlane.xlu0 %70 }
  0x88   :  { %v80_v17 = vmul.f32 %v2326_v10, %v71_v16 }
  0x8a   :  { %v82_v18 = vsub.f32 %v62_v1, %v80_v17 }
  0x8c   :  { %v84_v19 = vmul.f32 %v82_v18, %v82_v18 }
  0x8e   :  { %v88_v20 = vsel %vm65_vm0, %v84_v19, 0.0 }
  0x8f   :  { %89 = vadd.xlane.f32.xlu1 %v88_v20 }
  0xfa   :  { %v87_v22 = vpop.xlane.xlu1 %86 }
  0xfb   :  { %v91_v24 = vmul.f32 %v87_v22, %v2326_v10 }
  0xfd   :  { %v93_v25 = vadd.f32 1e-12, %v91_v24 }
  0xff   :  { %2094 = vrsqrt.f32 %v93_v25  ;;  %vm101_vm3 = vweird.f32 %v93_v25 }
 0x102   :  { %v90_v26 = vpop.xlane.xlu1 %89 }
 0x103   :  { %v92_v27 = vmul.f32 %v90_v26, %v2326_v10 }
 0x105   :  { %v2095_v28 = vpop.eup %2094  ;;  %v94_v29 = vadd.f32 1e-12, %v92_v27 }
 0x106   :  { %v96_v30 = vmul.f32 %v2095_v28, %v93_v25  ;;  %vm102_vm2 = vweird.f32 %v2095_v28 }
 0x107   :  { %2096 = vrsqrt.f32 %v94_v29  ;;  %vm103_vm4 = vmor %vm101_vm3, %vm102_vm2  ;;  %vm111_vm6 = vweird.f32 %v94_v29  ;;  %vm908_vm3 = vcmask 523264  }
 0x108   :  { %v97_v31 = vmul.f32 %v2095_v28, %v96_v30 }
 0x10a   :  { %v98_v32 = vmul.f32 0.5, %v97_v31 }
 0x10c   :  { %v99_v33 = vsub.f32 1.5, %v98_v32 }
 0x10d   :  { %v2097_v34 = vpop.eup %2096 }
 0x10e   :  { %v100_v35 = vmul.f32 %v2095_v28, %v99_v33  ;;  %v106_v36 = vmul.f32 %v2097_v34, %v94_v29  ;;  %vm112_vm5 = vweird.f32 %v2097_v34 }
 0x10f   :  { %vm113_vm7 = vmor %vm111_vm6, %vm112_vm5 }
 0x110   :  { %v107_v37 = vmul.f32 %v2097_v34, %v106_v36  ;;  %v104_v38 = vsel %vm103_vm4, %v2095_v28, %v100_v35  ;;  %v2069_v36 = vld [vmem:[%s2910_s1 + $0x3] ss:$0 sm:$0xff] }
 0x111   :  { %v115_v41 = vmul.f32 %v104_v38, %v81_v13 }
 0x112   :  { %v108_v39 = vmul.f32 0.5, %v107_v37 }
 0x113   :  { %v120_v46 = vmul.f32 %v2065_v42, %v115_v41  ;;  %v2431_v41 = vld [vmem:[%s2910_s1 + $0x2] ss:$0 sm:$0xff] }
 0x114   :  { %v109_v40 = vsub.f32 1.5, %v108_v39 }
 0x115   :  { %v2346_v49 = vadd.f32 %v2066_v47, %v120_v46 }
 0x116   :  { %v110_v43 = vmul.f32 %v2097_v34, %v109_v40 }
 0x118   :  { %v114_v44 = vsel %vm113_vm7, %v2097_v34, %v110_v43 }
 0x119   :  { %v116_v45 = vmul.f32 %v114_v44, %v82_v18 }
 0x11b   :  { %v121_v48 = vmul.f32 %v2065_v42, %v116_v45  ;;  %v2436_v42 = vld [vmem:[%s2910_s1 + $0x7] ss:$0 sm:$0xff] }
 0x11d   :  { %v2348_v50 = vadd.f32 %v2066_v47, %v121_v48 }
 0x11f   :  { %v135_v51 = vpack.c.bf16 %v2348_v50, %v2346_v49 }
 0x121   :  { %1884 = vmatmul.msk.bf16.vlgmr.msra.gmra.mxu0 %vm65_vm0, %v135_v51 }
 0x19e   :  { %v168_v53 = vpop.f32.mrf.mxu0 }
 0x19f   :  { %v169_v54 = vadd.f32 %v2067_v52, %v168_v53  ;;  %v2448_v53 = vld [vmem:[%s2910_s1 + $0x6] ss:$0 sm:$0xff] }
 0x1a1   :  { %v2356_v55 = vpack.c.bf16 %v169_v54, %v169_v54 }
 0x1a3   :  { %180 = vrot.lane.b32.xlu0 %v2356_v55, %s2214_s28  ;;  %176 = vrot.lane.b32.xlu2 %v2356_v55, %s2215_s3  ;;  %v213_v16 = vunpack.c.l.b16 %v2356_v55 }
 0x1a5   :  { %v2402_v17 = vpack.c.b16 %v213_v16, %v213_v16 }
 0x1a6   :  { %v170_v56 = vpop.f32.mrf.mxu0 }
 0x1a7   :  { %v171_v57 = vadd.f32 %v2067_v52, %v170_v56 }
 0x1a9   :  { %v2362_v58 = vpack.c.bf16 %v171_v57, %v171_v57  ;;  %v2455_v57 = vld [vmem:[%s2910_s1] ss:$0 sm:$0xff] }
 0x1ab   :  { %183 = vrot.lane.b32.xlu1 %v2362_v58, %s2215_s3  ;;  %178 = vrot.lane.b32.xlu2 %v2356_v55, %s2216_s29  ;;  %v306_v4 = vunpack.c.l.b16 %v2362_v58 }
 0x1ad   :  { %v2387_v8 = vpack.c.b16 %v306_v4, %v306_v4 }
 0x1b3   :  { %185 = vrot.lane.b32.xlu2 %v2362_v58, %s2216_s29 }
 0x1bb   :  { %187 = vrot.lane.b32.xlu2 %v2362_v58, %s2214_s28 }
 0x1fd   :  { %v177_v59 = vpop.permute.xlu2 %176 }
 0x1fe   :  { %v237_v60 = vunpack.c.l.b16 %v177_v59 }
 0x200   :  { %v2372_v61 = vpack.c.b16 %v237_v60, %v237_v60 }
 0x202   :  { %239 = vrot.lane.b32.xlu2 %v2372_v61, %s2217_s30 }
 0x205   :  { %v179_v62 = vpop.permute.xlu2 %178 }
 0x206   :  { %v260_v63 = vunpack.c.l.b16 %v179_v62 }
 0x208   :  { %v2376_v0 = vpack.c.b16 %v260_v63, %v260_v63  ;;  %v2461_v63 = vld [vmem:[%s2910_s1 + $0x1] ss:$0 sm:$0xff] }
 0x20a   :  { %262 = vrot.lane.b32.xlu0 %v2376_v0, %s2217_s30 }
 0x20d   :  { %v186_v1 = vpop.permute.xlu2 %185 }
 0x20e   :  { %v352_v2 = vunpack.c.l.b16 %v186_v1 }
 0x210   :  { %v2380_v3 = vpack.c.b16 %v352_v2, %v352_v2 }
 0x212   :  { %354 = vrot.lane.b32.xlu0 %v2380_v3, %s2217_s30 }
 0x215   :  { %v181_v5 = vpop.permute.xlu0 %180  ;;  %v188_v9 = vpop.permute.xlu2 %187 }
 0x216   :  { %v283_v6 = vunpack.c.l.b16 %v181_v5  ;;  %v375_v11 = vunpack.c.l.b16 %v188_v9 }
 0x218   :  { %v2385_v7 = vpack.c.b16 %v283_v6, %v283_v6  ;;  %v2393_v14 = vpack.c.b16 %v375_v11, %v375_v11  ;;  %v2468_v6 = vld [vmem:[%s2910_s1 + $0x5] ss:$0 sm:$0xff] }
 0x21a   :  { %285 = vrot.lane.b32.xlu2 %v2385_v7, %s2217_s30  ;;  %308 = vrot.lane.b32.xlu0 %v2387_v8, %s2217_s30 }
 0x21d   :  { %v184_v12 = vpop.permute.xlu1 %183 }
 0x21e   :  { %v329_v13 = vunpack.c.l.b16 %v184_v12 }
 0x220   :  { %v2395_v15 = vpack.c.b16 %v329_v13, %v329_v13 }
 0x222   :  { %331 = vrot.lane.b32.xlu1 %v2395_v15, %s2217_s30  ;;  %377 = vrot.lane.b32.xlu2 %v2393_v14, %s2217_s30 }
 0x22a   :  { %215 = vrot.lane.b32.xlu1 %v2402_v17, %s2217_s30 }
 0x25c   :  { %v240_v18 = vpop.permute.xlu2 %239 }
 0x25d   :  { %v245_v19 = vsel %vm217_vm8, %v240_v18, 0 }
 0x25e   :  { %254 = vmatpush.bf16.xpose.msra.mxu2 %v245_v19 }
 0x265   :  { %1886 = vmatmul.msk.bf16.vlgmr.msra.gmra.mxu2 %vm217_vm8, %v177_v59 }
 0x274   :  { %v286_v20 = vpop.permute.xlu2 %285 }
 0x275   :  { %v291_v21 = vsel %vm217_vm8, %v286_v20, 0 }
 0x276   :  { %300 = vmatpush.bf16.xpose.msrb.mxu0 %v291_v21 }
 0x27c   :  { %v263_v22 = vpop.permute.xlu0 %262  ;;  %v378_v23 = vpop.permute.xlu2 %377 }
 0x27d   :  { %v383_v24 = vsel %vm217_vm8, %v378_v23, 0  ;;  %1888 = vmatmul.msk.bf16.vlgmr.msrb.gmra.mxu0 %vm217_vm8, %v181_v5  ;;  %v268_v25 = vsel %vm217_vm8, %v263_v22, 0  ;;  %v2476_v22 = vld [vmem:[%s2910_s1 + $0x4] ss:$0 sm:$0xff] }
 0x27e   :  { %277 = vmatpush.bf16.xpose.msra.mxu3 %v268_v25  ;;  %392 = vmatpush.bf16.xpose.msra.mxu0 %v383_v24 }
 0x284   :  { %v355_v26 = vpop.permute.xlu0 %354 }
 0x285   :  { %1887 = vmatmul.msk.bf16.vlgmr.msra.gmra.mxu3 %vm217_vm8, %v179_v62  ;;  %v360_v27 = vsel %vm217_vm8, %v355_v26, 0 }
 0x286   :  { %369 = vmatpush.bf16.xpose.msrb.mxu3 %v360_v27 }
 0x28c   :  { %v309_v30 = vpop.permute.xlu0 %308 }
 0x28d   :  { %1892 = vmatmul.msk.bf16.vlgmr.msra.gmra.mxu0 %vm217_vm8, %v188_v9  ;;  %v314_v33 = vsel %vm217_vm8, %v309_v30, 0 }
 0x294   :  { %v332_v28 = vpop.permute.xlu1 %331 }
 0x295   :  { %1891 = vmatmul.msk.bf16.vlgmr.msrb.gmra.mxu3 %vm217_vm8, %v186_v1  ;;  %v337_v29 = vsel %vm217_vm8, %v332_v28, 0 }
 0x296   :  { %346 = vmatpush.bf16.xpose.msrb.mxu2 %v337_v29 }
 0x29c   :  { %v216_v31 = vpop.permute.xlu1 %215 }
 0x29d   :  { %1890 = vmatmul.msk.bf16.vlgmr.msrb.gmra.mxu2 %vm217_vm8, %v184_v12  ;;  %v222_v32 = vsel %vm217_vm8, %v216_v31, 0 }
 0x29e   :  { %231 = vmatpush.bf16.xpose.msra.mxu1 %v222_v32 }
 0x2a5   :  { %1885 = vmatmul.msk.bf16.vlgmr.msra.gmra.mxu1 %vm217_vm8, %v2356_v55 }
 0x2a6   :  { %323 = vmatpush.bf16.xpose.msrb.mxu1 %v314_v33 }
 0x2b5   :  { %1889 = vmatmul.msk.bf16.vlgmr.msrb.gmra.mxu1 %vm217_vm8, %v2362_v58 }
 0x2e8   :  { %v256_v34 = vpop.f32.mrf.mxu2 }
 0x2e9   :  { %v257_v4 = vadd.f32 %v2461_v63, %v256_v34 }
 0x2eb   :  { %v401_v9 = vsel %vm217_vm8, %v257_v4, -inf }
 0x2f0   :  { %v258_v35 = vpop.f32.mrf.mxu2 }
 0x2fa   :  { %v302_v37 = vpop.f32.mrf.mxu0 }
 0x2fb   :  { %v303_v38 = vadd.f32 %v2069_v36, %v302_v37 }
 0x2fd   :  { %v407_v39 = vsel %vm217_vm8, %v303_v38, -inf }
 0x2fe   :  { %408 = vmax.xlane.f32.xlu0 %v407_v39 }
 0x302   :  { %v304_v40 = vpop.f32.mrf.mxu0 }
 0x308   :  { %v279_v43 = vpop.f32.mrf.mxu3 }
 0x309   :  { %v280_v44 = vadd.f32 %v2431_v41, %v279_v43 }
 0x30a   :  { %v394_v45 = vpop.f32.mrf.mxu0 }
 0x30b   :  { %v2440_v46 = vadd.f32 %v2436_v42, %v394_v45  ;;  %v404_v47 = vsel %vm217_vm8, %v280_v44, -inf }
 0x30c   :  { %405 = vmax.xlane.f32.xlu1 %v404_v47 }
 0x30d   :  { %v419_v48 = vsel %vm217_vm8, %v2440_v46, -inf }
 0x30e   :  { %420 = vmax.xlane.f32.xlu0 %v419_v48 }
 0x310   :  { %v281_v51 = vpop.f32.mrf.mxu3 }
 0x312   :  { %v396_v52 = vpop.f32.mrf.mxu0 }
 0x318   :  { %v371_v54 = vpop.f32.mrf.mxu3 }
 0x319   :  { %v372_v55 = vadd.f32 %v2448_v53, %v371_v54 }
 0x31b   :  { %v416_v56 = vsel %vm217_vm8, %v372_v55, -inf }
 0x31c   :  { %417 = vmax.xlane.f32.xlu1 %v416_v56 }
 0x320   :  { %v348_v58 = vpop.f32.mrf.mxu2  ;;  %v373_v59 = vpop.f32.mrf.mxu3 }
 0x321   :  { %v349_v11 = vadd.f32 %v2468_v6, %v348_v58 }
 0x322   :  { %v233_v60 = vpop.f32.mrf.mxu1 }
 0x323   :  { %v234_v62 = vadd.f32 %v2455_v57, %v233_v60  ;;  %v413_v13 = vsel %vm217_vm8, %v349_v11, -inf }
 0x325   :  { %v398_v1 = vsel %vm217_vm8, %v234_v62, -inf }
 0x326   :  { %399 = vmax.xlane.f32.xlu2 %v398_v1 }
 0x328   :  { %v350_v2 = vpop.f32.mrf.mxu2 }
 0x32a   :  { %v235_v5 = vpop.f32.mrf.mxu1 }
 0x32e   :  { %402 = vmax.xlane.f32.xlu2 %v401_v9 }
 0x332   :  { %v325_v12 = vpop.f32.mrf.mxu1 }
 0x333   :  { %v2480_v26 = vadd.f32 %v2476_v22, %v325_v12 }
 0x335   :  { %v410_v28 = vsel %vm217_vm8, %v2480_v26, -inf }
 0x336   :  { %414 = vmax.xlane.f32.xlu2 %v413_v13 }
 0x33a   :  { %v327_v16 = vpop.f32.mrf.mxu1 }
 0x371   :  { %v409_v18 = vpop.xlane.xlu0 %408 }
 0x372   :  { %v425_v19 = vsub.f32 %v303_v38, %v409_v18 }
 0x374   :  { %v436_v20 = vmul.f32 1.442695, %v425_v19 }
 0x376   :  { %2098 = vpow2.f32 %v436_v20 }
 0x37c   :  { %v2099_v21 = vpop.eup %2098 }
 0x37d   :  { %v455_v23 = vsel %vm217_vm8, %v2099_v21, 0.0 }
 0x37e   :  { %456 = vadd.xlane.f32.xlu2 %v455_v23 }
 0x37f   :  { %v406_v24 = vpop.xlane.xlu1 %405 }
 0x380   :  { %v424_v25 = vsub.f32 %v280_v44, %v406_v24 }
 0x382   :  { %v434_v27 = vmul.f32 1.442695, %v424_v25 }
 0x384   :  { %2100 = vpow2.f32 %v434_v27 }
 0x386   :  { %411 = vmax.xlane.f32.xlu2 %v410_v28 }
 0x38a   :  { %v2484_v29 = vpop.eup %2100 }
 0x38b   :  { %v452_v30 = vsel %vm217_vm8, %v2484_v29, 0.0 }
 0x38c   :  { %453 = vadd.xlane.f32.xlu0 %v452_v30 }
 0x38f   :  { %v418_v38 = vpop.xlane.xlu1 %417 }
 0x390   :  { %v428_v40 = vsub.f32 %v372_v55, %v418_v38  ;;  %v421_v55 = vpop.xlane.xlu0 %420 }
 0x391   :  { %v429_v56 = vsub.f32 %v2440_v46, %v421_v55 }
 0x392   :  { %v442_v44 = vmul.f32 1.442695, %v428_v40 }
 0x393   :  { %v444_v58 = vmul.f32 1.442695, %v429_v56 }
 0x399   :  { %v400_v31 = vpop.xlane.xlu2 %399 }
 0x39e   :  { %558 = vrot.lane.b32.xlu2 %v2385_v7, %s2218_s2  ;;  %v422_v7 = vsub.f32 %v234_v62, %v400_v31 }
 0x3a0   :  { %537 = vrot.lane.b32.xlu0 %v2376_v0, %s2218_s2  ;;  %v430_v45 = vmul.f32 1.442695, %v422_v7 }
 0x3a1   :  { %v403_v32 = vpop.xlane.xlu2 %402 }
 0x3a2   :  { %v423_v33 = vsub.f32 %v257_v4, %v403_v32 }
 0x3a4   :  { %v432_v34 = vmul.f32 1.442695, %v423_v33 }
 0x3a6   :  { %2102 = vpow2.f32 %v432_v34 }
 0x3a9   :  { %v415_v37 = vpop.xlane.xlu2 %414 }
 0x3aa   :  { %v427_v39 = vsub.f32 %v349_v11, %v415_v37 }
 0x3ac   :  { %v2492_v35 = vpop.eup %2102  ;;  %v440_v43 = vmul.f32 1.442695, %v427_v39 }
 0x3ad   :  { %v449_v36 = vsel %vm217_vm8, %v2492_v35, 0.0 }
 0x3ae   :  { %450 = vadd.xlane.f32.xlu1 %v449_v36  ;;  %2104 = vpow2.f32 %v440_v43 }
 0x3af   :  { %2106 = vpow2.f32 %v442_v44 }
 0x3b0   :  { %2108 = vpow2.f32 %v430_v45 }
 0x3b1   :  { %2110 = vpow2.f32 %v444_v58 }
 0x3b4   :  { %v2496_v0 = vpop.eup %2104 }
 0x3b5   :  { %v2498_v47 = vpop.eup %2106  ;;  %v461_v48 = vsel %vm217_vm8, %v2496_v0, 0.0 }
 0x3b6   :  { %v464_v51 = vsel %vm217_vm8, %v2498_v47, 0.0  ;;  %v2506_v52 = vpop.eup %2108 }
 0x3b7   :  { %v446_v54 = vsel %vm217_vm8, %v2506_v52, 0.0 }
 0x3c7   :  { %516 = vrot.lane.b32.xlu1 %v2372_v61, %s2218_s2  ;;  %462 = vadd.xlane.f32.xlu2 %v461_v48  ;;  %v2517_v61 = vpop.eup %2110 }
 0x3c8   :  { %v467_v59 = vsel %vm217_vm8, %v2517_v61, 0.0 }
 0x3ca   :  { %465 = vadd.xlane.f32.xlu0 %v464_v51 }
 0x3d2   :  { %447 = vadd.xlane.f32.xlu0 %v446_v54 }
 0x3df   :  { %600 = vrot.lane.b32.xlu2 %v2395_v15, %s2218_s2 }
 0x3e6   :  { %579 = vrot.lane.b32.xlu0 %v2387_v8, %s2218_s2 }
 0x3e7   :  { %621 = vrot.lane.b32.xlu2 %v2380_v3, %s2218_s2 }
 0x3ef   :  { %642 = vrot.lane.b32.xlu2 %v2393_v14, %s2218_s2 }
 0x3f1   :  { %468 = vadd.xlane.f32.xlu1 %v467_v59  ;;  %v457_v46 = vpop.xlane.xlu2 %456 }
 0x3f2   :  { %2112 = vrcp.f32 %v457_v46 }
 0x3f8   :  { %v2113_v60 = vpop.eup %2112 }
 0x3f9   :  { %v412_v15 = vpop.xlane.xlu2 %411  ;;  %v481_v62 = vmul.f32 %v2113_v60, %v2099_v21 }
 0x3fa   :  { %v426_v4 = vsub.f32 %v2480_v26, %v412_v15 }
 0x3fb   :  { %v489_v3 = vpack.c.bf16 %v481_v62, %v481_v62 }
 0x3fc   :  { %v438_v14 = vmul.f32 1.442695, %v426_v4 }
 0x3ff   :  { %v454_v2 = vpop.xlane.xlu0 %453 }
 0x400   :  { %2114 = vrcp.f32 %v454_v2 }
 0x401   :  { %v559_v8 = vpop.permute.xlu2 %558  ;;  %2116 = vpow2.f32 %v438_v14 }
 0x402   :  { %v564_v1 = vsel %vm499_vm9, %v559_v8, 0 }
 0x403   :  { %573 = vmatpush.bf16.msrb.mxu0 %v564_v1 }
 0x406   :  { %1896 = vmatmul.msk.bf16.vlgmr.msrb.gmra.mxu0 %vm217_vm8, %v489_v3  ;;  %v2115_v5 = vpop.eup %2114 }
 0x407   :  { %v480_v9 = vmul.f32 %v2115_v5, %v2484_v29  ;;  %v2117_v13 = vpop.eup %2116 }
 0x408   :  { %v458_v18 = vsel %vm217_vm8, %v2117_v13, 0.0 }
 0x409   :  { %v488_v16 = vpack.c.bf16 %v480_v9, %v480_v9 }
 0x40a   :  { %494 = vrot.lane.b32.xlu1 %v2402_v17, %s2218_s2 }
 0x412   :  { %v538_v11 = vpop.permute.xlu0 %537 }
 0x413   :  { %v543_v12 = vsel %vm499_vm9, %v538_v11, 0 }
 0x414   :  { %552 = vmatpush.bf16.msra.mxu3 %v543_v12 }
 0x417   :  { %1895 = vmatmul.msk.bf16.vlgmr.msra.gmra.mxu3 %vm217_vm8, %v488_v16 }
 0x418   :  { %459 = vadd.xlane.f32.xlu2 %v458_v18 }
 0x421   :  { %v451_v19 = vpop.xlane.xlu1 %450 }
 0x422   :  { %2118 = vrcp.f32 %v451_v19 }
 0x428   :  { %v2119_v20 = vpop.eup %2118 }
 0x429   :  { %v479_v17 = vmul.f32 %v2119_v20, %v2492_v35 }
 0x42b   :  { %v487_v25 = vpack.c.bf16 %v479_v17, %v479_v17 }
 0x439   :  { %v517_v21 = vpop.permute.xlu1 %516 }
 0x43a   :  { %v522_v23 = vsel %vm499_vm9, %v517_v21, 0  ;;  %v463_v24 = vpop.xlane.xlu2 %462 }
 0x43b   :  { %531 = vmatpush.bf16.msra.mxu2 %v522_v23  ;;  %2120 = vrcp.f32 %v463_v24 }
 0x43d   :  { %v466_v26 = vpop.xlane.xlu0 %465 }
 0x43e   :  { %1894 = vmatmul.msk.bf16.vlgmr.msra.gmra.mxu2 %vm217_vm8, %v487_v25  ;;  %2122 = vrcp.f32 %v466_v26 }
 0x441   :  { %v2121_v29 = vpop.eup %2120 }
 0x442   :  { %v601_v27 = vpop.permute.xlu2 %600  ;;  %v483_v31 = vmul.f32 %v2121_v29, %v2496_v0 }
 0x443   :  { %v606_v28 = vsel %vm499_vm9, %v601_v27, 0 }
 0x444   :  { %615 = vmatpush.bf16.msrb.mxu2 %v606_v28  ;;  %v2123_v30 = vpop.eup %2122  ;;  %v491_v35 = vpack.c.bf16 %v483_v31, %v483_v31 }
 0x445   :  { %v484_v32 = vmul.f32 %v2123_v30, %v2498_v47  ;;  %v448_v7 = vpop.xlane.xlu0 %447 }
 0x447   :  { %v492_v36 = vpack.c.bf16 %v484_v32, %v484_v32 }
 0x44a   :  { %v622_v33 = vpop.permute.xlu2 %621 }
 0x44b   :  { %v627_v34 = vsel %vm499_vm9, %v622_v33, 0 }
 0x44c   :  { %636 = vmatpush.bf16.msrb.mxu3 %v627_v34 }
 0x44e   :  { %1898 = vmatmul.msk.bf16.vlgmr.msrb.gmra.mxu2 %vm217_vm8, %v491_v35  ;;  %v2036_v35 = vld [vmem:[%s2884_s6 + $0x8] sm:$0xff] }
 0x44f   :  { %1899 = vmatmul.msk.bf16.vlgmr.msrb.gmra.mxu3 %vm217_vm8, %v492_v36  ;;  %v2035_v36 = vld [vmem:[%s2884_s6] sm:$0xff] }
 0x452   :  { %v643_v37 = vpop.permute.xlu2 %642 }
 0x453   :  { %v648_v38 = vsel %vm499_vm9, %v643_v37, 0 }
 0x454   :  { %657 = vmatpush.bf16.msra.mxu0 %v648_v38 }
 0x458   :  { %v580_v47 = vpop.permute.xlu0 %579 }
 0x459   :  { %v585_v54 = vsel %vm499_vm9, %v580_v47, 0 }
 0x464   :  { %v469_v39 = vpop.xlane.xlu1 %468 }
 0x465   :  { %2124 = vrcp.f32 %v469_v39 }
 0x466   :  { %2126 = vrcp.f32 %v448_v7 }
 0x46b   :  { %v2125_v40 = vpop.eup %2124 }
 0x46c   :  { %v485_v43 = vmul.f32 %v2125_v40, %v2517_v61  ;;  %v2127_v0 = vpop.eup %2126 }
 0x46d   :  { %v478_v45 = vmul.f32 %v2127_v0, %v2506_v52 }
 0x46e   :  { %v493_v44 = vpack.c.bf16 %v485_v43, %v485_v43 }
 0x46f   :  { %v486_v55 = vpack.c.bf16 %v478_v45, %v478_v45 }
 0x470   :  { %1900 = vmatmul.msk.bf16.vlgmr.msra.gmra.mxu0 %vm217_vm8, %v493_v44 }
 0x47c   :  { %v495_v48 = vpop.permute.xlu1 %494 }
 0x47d   :  { %v501_v51 = vsel %vm499_vm9, %v495_v48, 0 }
 0x47e   :  { %510 = vmatpush.bf16.msra.mxu1 %v501_v51 }
 0x481   :  { %1893 = vmatmul.msk.bf16.vlgmr.msra.gmra.mxu1 %vm217_vm8, %v486_v55 }
 0x482   :  { %594 = vmatpush.bf16.msrb.mxu1 %v585_v54 }
 0x483   :  { %v575_v56 = vpop.f32.mrf.mxu0 }
 0x484   :  { %v666_v27 = vpack.c.bf16 %v575_v56, %v575_v56 }
 0x486   :  { %v682_v29 = vunpack.c.l.b16 %v666_v27  ;;  %749 = vmatpush.bf16.msra.mxu1 %v2036_v35 }
 0x488   :  { %v683_v31 = vpack.c.b16 %v682_v29, %v682_v29 }
 0x48a   :  { %750 = vmatpush.bf16.msra.mxu1 %v2035_v36  ;;  %v2077_v36 = vld [vmem:[%s2886_s8] ss:$0 sm:$0xff] }
 0x48b   :  { %v577_v58 = vpop.f32.mrf.mxu0  ;;  %v460_v61 = vpop.xlane.xlu2 %459 }
 0x48c   :  { %2128 = vrcp.f32 %v460_v61  ;;  %v2076_v61 = vld [vmem:[%s2885_s7] ss:$0 sm:$0xff] }
 0x492   :  { %v2129_v59 = vpop.eup %2128 }
 0x493   :  { %v482_v46 = vmul.f32 %v2129_v59, %v2117_v13 }
 0x495   :  { %v490_v15 = vpack.c.bf16 %v482_v46, %v482_v46 }
 0x497   :  { %1897 = vmatmul.msk.bf16.vlgmr.msrb.gmra.mxu1 %vm217_vm8, %v490_v15 }
 0x49a   :  { %v554_v52 = vpop.f32.mrf.mxu3 }
 0x49b   :  { %v665_v11 = vpack.c.bf16 %v554_v52, %v554_v52 }
 0x49d   :  { %v677_v16 = vunpack.c.l.b16 %v665_v11 }
 0x49f   :  { %v678_v19 = vpack.c.b16 %v677_v16, %v677_v16 }
 0x4a2   :  { %v556_v60 = vpop.f32.mrf.mxu3 }
 0x4c1   :  { %v533_v62 = vpop.f32.mrf.mxu2 }
 0x4c2   :  { %v664_v8 = vpack.c.bf16 %v533_v62, %v533_v62 }
 0x4c4   :  { %v672_v1 = vunpack.c.l.b16 %v664_v8 }
 0x4c6   :  { %v673_v3 = vpack.c.b16 %v672_v1, %v672_v1 }
 0x4c8   :  { %674 = vrot.lane.b32.xlu1 %v673_v3, %s2903_s23 }
 0x4c9   :  { %v535_v2 = vpop.f32.mrf.mxu2 }
 0x4d1   :  { %v617_v4 = vpop.f32.mrf.mxu2 }
 0x4d2   :  { %v668_v14 = vpack.c.bf16 %v617_v4, %v617_v4  ;;  %v638_v5 = vpop.f32.mrf.mxu3 }
 0x4d3   :  { %v669_v23 = vpack.c.bf16 %v638_v5, %v638_v5 }
 0x4d4   :  { %v696_v9 = vunpack.c.l.b16 %v668_v14 }
 0x4d5   :  { %v701_v26 = vunpack.c.l.b16 %v669_v23 }
 0x4d6   :  { %v697_v12 = vpack.c.b16 %v696_v9, %v696_v9 }
 0x4d7   :  { %v702_v28 = vpack.c.b16 %v701_v26, %v701_v26 }
 0x4d8   :  { %698 = vrot.lane.b32.xlu1 %v697_v12, %s2903_s23 }
 0x4d9   :  { %v619_v13 = vpop.f32.mrf.mxu2 }
 0x4da   :  { %v640_v18 = vpop.f32.mrf.mxu3 }
 0x4e0   :  { %679 = vrot.lane.b32.xlu1 %v678_v19, %s2899_s24  ;;  %v2037_v19 = vld [vmem:[%s2888_s10] sm:$0xff] }
 0x4ed   :  { %v659_v20 = vpop.f32.mrf.mxu0 }
 0x4ee   :  { %v670_v17 = vpack.c.bf16 %v659_v20, %v659_v20 }
 0x4f0   :  { %v706_v21 = vunpack.c.l.b16 %v670_v17 }
 0x4f2   :  { %v707_v24 = vpack.c.b16 %v706_v21, %v706_v21 }
 0x4f4   :  { %708 = vrot.lane.b32.xlu0 %v707_v24, %s2901_s25 }
 0x4f5   :  { %v661_v25 = vpop.f32.mrf.mxu0 }
 0x4fc   :  { %703 = vrot.lane.b32.xlu0 %v702_v28, %s2899_s24 }
 0x4fe   :  { %v512_v30 = vpop.f32.mrf.mxu1 }
 0x4ff   :  { %v663_v0 = vpack.c.bf16 %v512_v30, %v512_v30 }
 0x504   :  { %684 = vrot.lane.b32.xlu0 %v683_v31, %s2901_s25 }
 0x506   :  { %v514_v32 = vpop.f32.mrf.mxu1 }
 0x514   :  { %v596_v33 = vpop.f32.mrf.mxu1 }
 0x515   :  { %v667_v40 = vpack.c.bf16 %v596_v33, %v596_v33 }
 0x51c   :  { %v598_v34 = vpop.f32.mrf.mxu1 }
 0x53a   :  { %v675_v37 = vpop.permute.xlu1 %674 }
 0x53b   :  { %v688_v48 = vsel %vm217_vm8, %v663_v0, %v675_v37 }
 0x54a   :  { %v699_v39 = vpop.permute.xlu1 %698 }
 0x54b   :  { %v712_v44 = vsel %vm217_vm8, %v667_v40, %v699_v39  ;;  %v2078_v40 = vld [vmem:[%s2887_s9] ss:$0 sm:$0xff] }
 0x552   :  { %v680_v45 = vpop.permute.xlu1 %679 }
 0x553   :  { %v691_v51 = vsel %vm689_vm10, %v688_v48, %v680_v45  ;;  %v2042_v48 = vld [vmem:[%s2890_s12 + $0x18] sm:$0xff] }
 0x554   :  { %916 = vmatpush.bf16.msra.mxu3 %v2042_v48 }
 0x566   :  { %v709_v38 = vpop.permute.xlu0 %708 }
 0x56e   :  { %v704_v43 = vpop.permute.xlu0 %703 }
 0x56f   :  { %v714_v7 = vsel %vm689_vm10, %v712_v44, %v704_v43 }
 0x570   :  { %v716_v47 = vsel %vm692_vm11, %v714_v7, %v709_v38 }
 0x571   :  { %v718_v54 = vrot.slane %v716_v47, 4 }
 0x576   :  { %v685_v55 = vpop.permute.xlu0 %684 }
 0x577   :  { %v694_v56 = vsel %vm692_vm11, %v691_v51, %v685_v55  ;;  %v2041_v51 = vld [vmem:[%s2890_s12 + $0x10] sm:$0xff]  ;;  %v2079_v55 = vld [vmem:[%s2889_s11] ss:$0 sm:$0xff] }
 0x578   :  { %v720_v58 = vsel %vm499_vm9, %v694_v56, %v718_v54  ;;  %917 = vmatpush.bf16.msra.mxu3 %v2041_v51  ;;  %v2040_v54 = vld [vmem:[%s2890_s12 + $0x8] sm:$0xff]  ;;  %v2039_v56 = vld [vmem:[%s2890_s12] sm:$0xff] }
 0x579   :  { %1909 = vmatmul.msk.bf16.vlgmr.msra.gmra.mxu1 %vm65_vm0, %v720_v58 }
 0x57c   :  { %918 = vmatpush.bf16.msra.mxu3 %v2040_v54 }
 0x580   :  { %919 = vmatpush.bf16.msra.mxu3 %v2039_v56 }
 0x5f6   :  { %v752_v59 = vpop.f32.mrf.mxu1 }
 0x5f7   :  { %v753_v46 = vadd.f32 %v2076_v61, %v752_v59 }
 0x5f9   :  { %v757_v15 = vadd.f32 %v753_v46, %v2346_v49 }
 0x5fb   :  { %v761_v52 = vsel %vm65_vm0, %v757_v15, 0.0 }
 0x5fc   :  { %762 = vadd.xlane.f32.xlu2 %v761_v52 }
 0x5fe   :  { %v754_v60 = vpop.f32.mrf.mxu1 }
 0x5ff   :  { %v755_v62 = vadd.f32 %v2076_v61, %v754_v60 }
 0x601   :  { %v758_v8 = vadd.f32 %v755_v62, %v2348_v50  ;;  %v2038_v50 = vld [vmem:[%s2888_s10 + $0x8] sm:$0xff] }
 0x602   :  { %845 = vmatpush.bf16.msra.mxu2 %v2038_v50 }
 0x603   :  { %v764_v1 = vsel %vm65_vm0, %v758_v8, 0.0 }
 0x604   :  { %765 = vadd.xlane.f32.xlu1 %v764_v1 }
 0x606   :  { %846 = vmatpush.bf16.msra.mxu2 %v2037_v19  ;;  %v2080_v19 = vld [vmem:[%s2891_s13] ss:$0 sm:$0xff] }
 0x66f   :  { %v763_v3 = vpop.xlane.xlu2 %762 }
 0x670   :  { %v767_v2 = vmul.f32 %v763_v3, %v2326_v10 }
 0x672   :  { %v769_v4 = vsub.f32 %v757_v15, %v767_v2 }
 0x674   :  { %v771_v14 = vmul.f32 %v769_v4, %v769_v4 }
 0x676   :  { %v773_v5 = vsel %vm65_vm0, %v771_v14, 0.0 }
 0x677   :  { %v766_v9 = vpop.xlane.xlu1 %765  ;;  %774 = vadd.xlane.f32.xlu0 %v773_v5 }
 0x678   :  { %v768_v49 = vmul.f32 %v766_v9, %v2326_v10 }
 0x67a   :  { %v770_v11 = vsub.f32 %v758_v8, %v768_v49 }
 0x67c   :  { %v772_v12 = vmul.f32 %v770_v11, %v770_v11 }
 0x67e   :  { %v776_v13 = vsel %vm65_vm0, %v772_v12, 0.0 }
 0x67f   :  { %777 = vadd.xlane.f32.xlu2 %v776_v13 }
 0x6ea   :  { %v775_v16 = vpop.xlane.xlu0 %774 }
 0x6eb   :  { %v779_v18 = vmul.f32 %v775_v16, %v2326_v10 }
 0x6ed   :  { %v781_v20 = vadd.f32 1e-12, %v779_v18 }
 0x6ef   :  { %2130 = vrsqrt.f32 %v781_v20  ;;  %vm789_vm13 = vweird.f32 %v781_v20 }
 0x6f2   :  { %v778_v17 = vpop.xlane.xlu2 %777 }
 0x6f3   :  { %v780_v21 = vmul.f32 %v778_v17, %v2326_v10 }
 0x6f5   :  { %v2131_v23 = vpop.eup %2130  ;;  %v782_v24 = vadd.f32 1e-12, %v780_v21 }
 0x6f6   :  { %v784_v25 = vmul.f32 %v2131_v23, %v781_v20  ;;  %vm790_vm12 = vweird.f32 %v2131_v23 }
 0x6f7   :  { %2132 = vrsqrt.f32 %v782_v24  ;;  %vm791_vm14 = vmor %vm789_vm13, %vm790_vm12  ;;  %vm799_vm1 = vweird.f32 %v782_v24 }
 0x6f8   :  { %v785_v26 = vmul.f32 %v2131_v23, %v784_v25 }
 0x6fa   :  { %v786_v27 = vmul.f32 0.5, %v785_v26 }
 0x6fc   :  { %v787_v28 = vsub.f32 1.5, %v786_v27 }
 0x6fd   :  { %v2133_v29 = vpop.eup %2132 }
 0x6fe   :  { %v788_v30 = vmul.f32 %v2131_v23, %v787_v28  ;;  %v794_v31 = vmul.f32 %v2133_v29, %v782_v24  ;;  %vm800_vm15 = vweird.f32 %v2133_v29 }
 0x6ff   :  { %vm801_vm2 = vmor %vm799_vm1, %vm800_vm15 }
 0x700   :  { %v795_v32 = vmul.f32 %v2133_v29, %v794_v31  ;;  %v792_v33 = vsel %vm791_vm14, %v2131_v23, %v788_v30 }
 0x701   :  { %v803_v37 = vmul.f32 %v792_v33, %v769_v4 }
 0x702   :  { %v796_v34 = vmul.f32 0.5, %v795_v32 }
 0x703   :  { %v808_v43 = vmul.f32 %v2077_v36, %v803_v37 }
 0x704   :  { %v797_v35 = vsub.f32 1.5, %v796_v34 }
 0x705   :  { %v813_v0 = vadd.f32 %v2078_v40, %v808_v43  ;;  %v2043_v43 = vld [vmem:[%s2882_s4 + $0x10] sm:$0xff] }
 0x706   :  { %v798_v38 = vmul.f32 %v2133_v29, %v797_v35 }
 0x708   :  { %v802_v39 = vsel %vm801_vm2, %v2133_v29, %v798_v38  ;;  %v2044_v38 = vld [vmem:[%s2882_s4 + $0x18] sm:$0xff]  ;;  %s1865_s4 = sshll.u32 %s2222_s0, 4  ;;  %s1866_s4 = int_to_ptr.vmem [resolvable:$true] %s1865_s4 }
 0x709   :  { %v804_v44 = vmul.f32 %v802_v39, %v770_v11  ;;  %1016 = vmatpush.bf16.msrb.mxu0 %v2044_v38 }
 0x70b   :  { %v809_v7 = vmul.f32 %v2077_v36, %v804_v44 }
 0x70d   :  { %v814_v45 = vadd.f32 %v2078_v40, %v809_v7  ;;  %1017 = vmatpush.bf16.msrb.mxu0 %v2043_v43 }
 0x70f   :  { %v815_v47 = vpack.c.bf16 %v814_v45, %v813_v0 }
 0x711   :  { %1918 = vmatmul.msk.bf16.vlgmr.msra.gmra.mxu2 %vm65_vm0, %v815_v47 }
 0x794   :  { %v848_v58 = vpop.f32.mrf.mxu2 }
 0x795   :  { %v849_v61 = vadd.f32 %v2079_v55, %v848_v58 }
 0x797   :  { %v853_v59 = vmul.f32 %v849_v61, %v849_v61 }
 0x799   :  { %v855_v46 = vmul.f32 %v853_v59, %v849_v61 }
 0x79b   :  { %v857_v15 = vmul.f32 0.044715, %v855_v46 }
 0x79c   :  { %v850_v52 = vpop.f32.mrf.mxu2 }
 0x79d   :  { %v859_v60 = vadd.f32 %v857_v15, %v849_v61  ;;  %v851_v62 = vadd.f32 %v2079_v55, %v850_v52 }
 0x79f   :  { %v861_v8 = vmul.f32 0.7978846, %v859_v60  ;;  %v854_v1 = vmul.f32 %v851_v62, %v851_v62  ;;  %v2081_v60 = vld [vmem:[%s2892_s14] ss:$0 sm:$0xff] }
 0x7a1   :  { %v856_v3 = vmul.f32 %v854_v1, %v851_v62  ;;  %2134 = vtanh.f32 %v861_v8 }
 0x7a3   :  { %v858_v2 = vmul.f32 0.044715, %v856_v3  ;;  %v2082_v3 = vld [vmem:[%s2893_s15] ss:$0 sm:$0xff] }
 0x7a5   :  { %v860_v4 = vadd.f32 %v858_v2, %v851_v62 }
 0x7a7   :  { %v862_v14 = vmul.f32 0.7978846, %v860_v4  ;;  %v2135_v5 = vpop.eup %2134 }
 0x7a8   :  { %v865_v9 = vadd.f32 1.0, %v2135_v5 }
 0x7a9   :  { %2136 = vtanh.f32 %v862_v14 }
 0x7aa   :  { %v867_v11 = vmul.f32 0.5, %v865_v9 }
 0x7ac   :  { %v869_v50 = vmul.f32 %v867_v11, %v849_v61  ;;  %v2083_v11 = vld [vmem:[%s2883_s5 + $0x1] ss:$0 sm:$0xff] }
 0x7af   :  { %v2137_v49 = vpop.eup %2136 }
 0x7b0   :  { %v866_v12 = vadd.f32 1.0, %v2137_v49 }
 0x7b2   :  { %v868_v13 = vmul.f32 0.5, %v866_v12 }
 0x7b4   :  { %v870_v16 = vmul.f32 %v868_v13, %v851_v62 }
 0x7b6   :  { %v871_v18 = vpack.c.bf16 %v870_v16, %v869_v50 }
 0x7b8   :  { %1935 = vmatmul.msk.bf16.vlgmr.msra.gmra.mxu3 %vm908_vm3, %v871_v18 }
 0x83b   :  { %v921_v20 = vpop.f32.mrf.mxu3 }
 0x83c   :  { %v922_v17 = vadd.f32 %v2080_v19, %v921_v20 }
 0x83e   :  { %v926_v21 = vadd.f32 %v922_v17, %v813_v0 }
 0x840   :  { %v930_v23 = vsel %vm65_vm0, %v926_v21, 0.0 }
 0x841   :  { %931 = vadd.xlane.f32.xlu2 %v930_v23 }
 0x843   :  { %v923_v24 = vpop.f32.mrf.mxu3 }
 0x844   :  { %v924_v25 = vadd.f32 %v2080_v19, %v923_v24 }
 0x846   :  { %v927_v26 = vadd.f32 %v924_v25, %v814_v45 }
 0x848   :  { %v933_v27 = vsel %vm65_vm0, %v927_v26, 0.0 }
 0x849   :  { %934 = vadd.xlane.f32.xlu2 %v933_v27 }
 0x8b4   :  { %v932_v28 = vpop.xlane.xlu2 %931 }
 0x8b5   :  { %v936_v29 = vmul.f32 %v932_v28, %v2326_v10 }
 0x8b7   :  { %v938_v30 = vsub.f32 %v926_v21, %v936_v29 }
 0x8b9   :  { %v940_v31 = vmul.f32 %v938_v30, %v938_v30 }
 0x8bb   :  { %v942_v32 = vsel %vm65_vm0, %v940_v31, 0.0 }
 0x8bc   :  { %943 = vadd.xlane.f32.xlu2 %v942_v32  ;;  %v935_v33 = vpop.xlane.xlu2 %934 }
 0x8bd   :  { %v937_v34 = vmul.f32 %v935_v33, %v2326_v10 }
 0x8bf   :  { %v939_v35 = vsub.f32 %v927_v26, %v937_v34 }
 0x8c1   :  { %v941_v36 = vmul.f32 %v939_v35, %v939_v35 }
 0x8c3   :  { %v945_v37 = vsel %vm65_vm0, %v941_v36, 0.0 }
 0x8c4   :  { %946 = vadd.xlane.f32.xlu2 %v945_v37 }
 0x92f   :  { %v944_v39 = vpop.xlane.xlu2 %943 }
 0x930   :  { %v948_v40 = vmul.f32 %v944_v39, %v2326_v10 }
 0x932   :  { %v950_v44 = vadd.f32 1e-12, %v948_v40 }
 0x934   :  { %2138 = vrsqrt.f32 %v950_v44  ;;  %vm958_vm5 = vweird.f32 %v950_v44 }
 0x937   :  { %v947_v7 = vpop.xlane.xlu2 %946 }
 0x938   :  { %v949_v0 = vmul.f32 %v947_v7, %v2326_v10 }
 0x93a   :  { %v2139_v45 = vpop.eup %2138  ;;  %v951_v47 = vadd.f32 1e-12, %v949_v0 }
 0x93b   :  { %v953_v48 = vmul.f32 %v2139_v45, %v950_v44  ;;  %vm959_vm4 = vweird.f32 %v2139_v45 }
 0x93c   :  { %2140 = vrsqrt.f32 %v951_v47  ;;  %vm960_vm6 = vmor %vm958_vm5, %vm959_vm4  ;;  %vm968_vm12 = vweird.f32 %v951_v47 }
 0x93d   :  { %v954_v51 = vmul.f32 %v2139_v45, %v953_v48 }
 0x93f   :  { %v955_v54 = vmul.f32 0.5, %v954_v51 }
 0x941   :  { %v956_v55 = vsub.f32 1.5, %v955_v54 }
 0x942   :  { %v2141_v56 = vpop.eup %2140 }
 0x943   :  { %v957_v58 = vmul.f32 %v2139_v45, %v956_v55  ;;  %v963_v61 = vmul.f32 %v2141_v56, %v951_v47  ;;  %vm969_vm7 = vweird.f32 %v2141_v56 }
 0x944   :  { %vm970_vm13 = vmor %vm968_vm12, %vm969_vm7  ;;  %vm1819_vm7 = vcmask 1040384   ;;  %vm1858_vm12 = vcmask 17408  }
 0x945   :  { %v964_v59 = vmul.f32 %v2141_v56, %v963_v61  ;;  %v961_v46 = vsel %vm960_vm6, %v2139_v45, %v957_v58 }
 0x946   :  { %v972_v62 = vmul.f32 %v961_v46, %v938_v30 }
 0x947   :  { %v965_v15 = vmul.f32 0.5, %v964_v59 }
 0x948   :  { %v977_v2 = vmul.f32 %v2081_v60, %v972_v62 }
 0x949   :  { %v966_v52 = vsub.f32 1.5, %v965_v15 }
 0x94a   :  { %v2634_v5 = vadd.f32 %v2082_v3, %v977_v2 }
 0x94b   :  { %v967_v8 = vmul.f32 %v2141_v56, %v966_v52 }
 0x94d   :  { %v971_v1 = vsel %vm970_vm13, %v2141_v56, %v967_v8 }
 0x94e   :  { %v973_v4 = vmul.f32 %v971_v1, %v939_v35 }
 0x950   :  { %v978_v14 = vmul.f32 %v2081_v60, %v973_v4 }
 0x952   :  { %v2636_v9 = vadd.f32 %v2082_v3, %v978_v14 }
 0x954   :  { %v984_v49 = vpack.c.bf16 %v2636_v9, %v2634_v5 }
 0x956   :  { %1949 = vmatmul.msk.bf16.vlgmr.msrb.gmra.mxu0 %vm65_vm0, %v984_v49 }
 0x9d3   :  { %v1019_v12 = vpop.f32.mrf.mxu0 }
 0x9d4   :  { %v1020_v13 = vadd.f32 %v2083_v11, %v1019_v12 }
 0x9d6   :  { %v2644_v50 = vpack.c.bf16 %v1020_v13, %v1020_v13 }
 0x9d8   :  { %1031 = vrot.lane.b32.xlu2 %v2644_v50, %s2214_s28  ;;  %1029 = vrot.lane.b32.xlu0 %v2644_v50, %s2216_s29  ;;  %v1040_v39 = vunpack.c.l.b16 %v2644_v50 }
 0x9d9   :  { %1027 = vrot.lane.b32.xlu1 %v2644_v50, %s2215_s3 }
 0x9da   :  { %v2688_v43 = vpack.c.b16 %v1040_v39, %v1040_v39 }
 0x9db   :  { %v1021_v16 = vpop.f32.mrf.mxu0 }
 0x9dc   :  { %v1022_v18 = vadd.f32 %v2083_v11, %v1021_v16 }
 0x9de   :  { %v2652_v19 = vpack.c.bf16 %v1022_v18, %v1022_v18 }
 0x9e0   :  { %1038 = vrot.lane.b32.xlu2 %v2652_v19, %s2214_s28  ;;  %1034 = vrot.lane.b32.xlu0 %v2652_v19, %s2215_s3  ;;  %v1132_v38 = vunpack.c.l.b16 %v2652_v19  ;;  %s2911_s3 = smov 8  }
 0x9e1   :  { %1036 = vrot.lane.b32.xlu1 %v2652_v19, %s2216_s29  ;;  %s2912_s29 = smov 24  }
 0x9e2   :  { %v2686_v40 = vpack.c.b16 %v1132_v38, %v1132_v38 }
 0xa32   :  { %v1032_v20 = vpop.permute.xlu2 %1031 }
 0xa33   :  { %v1109_v17 = vunpack.c.l.b16 %v1032_v20 }
 0xa35   :  { %v2660_v21 = vpack.c.b16 %v1109_v17, %v1109_v17  ;;  %v2186_v17 = vld [vmem:[%s2910_s1 + $0x3] ss:$0 sm:$0xff] }
 0xa37   :  { %1111 = vrot.lane.b32.xlu2 %v2660_v21, %s2217_s30 }
 0xa3a   :  { %v1039_v23 = vpop.permute.xlu2 %1038 }
 0xa3b   :  { %v1201_v24 = vunpack.c.l.b16 %v1039_v23 }
 0xa3d   :  { %v2664_v25 = vpack.c.b16 %v1201_v24, %v1201_v24 }
 0xa3f   :  { %1203 = vrot.lane.b32.xlu2 %v2664_v25, %s2217_s30 }
 0xa4a   :  { %v1030_v26 = vpop.permute.xlu0 %1029 }
 0xa4b   :  { %v1086_v27 = vunpack.c.l.b16 %v1030_v26  ;;  %v1028_v28 = vpop.permute.xlu1 %1027 }
 0xa4c   :  { %v1063_v29 = vunpack.c.l.b16 %v1028_v28 }
 0xa4d   :  { %v2668_v30 = vpack.c.b16 %v1086_v27, %v1086_v27 }
 0xa4e   :  { %v2670_v31 = vpack.c.b16 %v1063_v29, %v1063_v29 }
 0xa4f   :  { %1088 = vrot.lane.b32.xlu1 %v2668_v30, %s2217_s30 }
 0xa50   :  { %1065 = vrot.lane.b32.xlu0 %v2670_v31, %s2217_s30 }
 0xa52   :  { %v1035_v32 = vpop.permute.xlu0 %1034 }
 0xa53   :  { %v1155_v33 = vunpack.c.l.b16 %v1035_v32  ;;  %v1037_v34 = vpop.permute.xlu1 %1036 }
 0xa54   :  { %v1178_v35 = vunpack.c.l.b16 %v1037_v34 }
 0xa55   :  { %v2676_v36 = vpack.c.b16 %v1155_v33, %v1155_v33 }
 0xa56   :  { %v2678_v37 = vpack.c.b16 %v1178_v35, %v1178_v35 }
 0xa58   :  { %1157 = vrot.lane.b32.xlu0 %v2676_v36, %s2217_s30  ;;  %1180 = vrot.lane.b32.xlu1 %v2678_v37, %s2217_s30 }
 0xa60   :  { %1134 = vrot.lane.b32.xlu1 %v2686_v40, %s2217_s30  ;;  %1042 = vrot.lane.b32.xlu0 %v2688_v43, %s2217_s30  ;;  %s2913_s30 = smov 16  }
 0xa91   :  { %v1112_v44 = vpop.permute.xlu2 %1111 }
 0xa92   :  { %v1117_v7 = vsel %vm217_vm8, %v1112_v44, 0 }
 0xa93   :  { %1126 = vmatpush.bf16.xpose.msra.mxu0 %v1117_v7 }
 0xa99   :  { %v1204_v0 = vpop.permute.xlu2 %1203 }
 0xa9a   :  { %v1209_v45 = vsel %vm217_vm8, %v1204_v0, 0  ;;  %1953 = vmatmul.msk.bf16.vlgmr.msra.gmra.mxu0 %vm217_vm8, %v1032_v20 }
 0xa9b   :  { %1218 = vmatpush.bf16.xpose.msrb.mxu0 %v1209_v45 }
 0xaaa   :  { %1957 = vmatmul.msk.bf16.vlgmr.msrb.gmra.mxu0 %vm217_vm8, %v1039_v23 }
 0xac1   :  { %v1089_v47 = vpop.permute.xlu1 %1088 }
 0xac2   :  { %v1066_v48 = vpop.permute.xlu0 %1065  ;;  %v1094_v51 = vsel %vm217_vm8, %v1089_v47, 0 }
 0xac3   :  { %v1071_v54 = vsel %vm217_vm8, %v1066_v48, 0  ;;  %1103 = vmatpush.bf16.xpose.msrb.mxu3 %v1094_v51 }
 0xac4   :  { %1080 = vmatpush.bf16.xpose.msrb.mxu2 %v1071_v54 }
 0xaca   :  { %v1158_v55 = vpop.permute.xlu0 %1157  ;;  %v1181_v56 = vpop.permute.xlu1 %1180  ;;  %1952 = vmatmul.msk.bf16.vlgmr.msrb.gmra.mxu3 %vm217_vm8, %v1030_v26 }
 0xacb   :  { %v1163_v58 = vsel %vm217_vm8, %v1158_v55, 0  ;;  %v1186_v61 = vsel %vm217_vm8, %v1181_v56, 0  ;;  %1951 = vmatmul.msk.bf16.vlgmr.msrb.gmra.mxu2 %vm217_vm8, %v1028_v28 }
 0xacc   :  { %1172 = vmatpush.bf16.xpose.msra.mxu2 %v1163_v58  ;;  %1195 = vmatpush.bf16.xpose.msra.mxu3 %v1186_v61 }
 0xad2   :  { %v1135_v59 = vpop.permute.xlu1 %1134  ;;  %v1043_v46 = vpop.permute.xlu0 %1042 }
 0xad3   :  { %v1140_v15 = vsel %vm217_vm8, %v1135_v59, 0  ;;  %v1048_v52 = vsel %vm217_vm8, %v1043_v46, 0 }
 0xad4   :  { %1057 = vmatpush.bf16.xpose.msrb.mxu1 %v1048_v52 }
 0xada   :  { %1956 = vmatmul.msk.bf16.vlgmr.msra.gmra.mxu3 %vm217_vm8, %v1037_v34 }
 0xadb   :  { %1950 = vmatmul.msk.bf16.vlgmr.msrb.gmra.mxu1 %vm217_vm8, %v2644_v50  ;;  %1955 = vmatmul.msk.bf16.vlgmr.msra.gmra.mxu2 %vm217_vm8, %v1035_v32 }
 0xadc   :  { %1149 = vmatpush.bf16.xpose.msra.mxu1 %v1140_v15 }
 0xaeb   :  { %1954 = vmatmul.msk.bf16.vlgmr.msra.gmra.mxu1 %vm217_vm8, %v2652_v19 }
 0xb17   :  { %v1128_v60 = vpop.f32.mrf.mxu0 }
 0xb1f   :  { %v1130_v62 = vpop.f32.mrf.mxu0 }
 0xb27   :  { %v1220_v8 = vpop.f32.mrf.mxu0 }
 0xb28   :  { %v1221_v12 = vadd.f32 %v2436_v42, %v1220_v8  ;;  %v1129_v42 = vadd.f32 %v2186_v17, %v1128_v60 }
 0xb2a   :  { %v1245_v19 = vsel %vm217_vm8, %v1221_v12, -inf  ;;  %v1233_v26 = vsel %vm217_vm8, %v1129_v42, -inf }
 0xb2f   :  { %v1222_v1 = vpop.f32.mrf.mxu0 }
 0xb4d   :  { %v1105_v3 = vpop.f32.mrf.mxu3 }
 0xb4e   :  { %v1082_v2 = vpop.f32.mrf.mxu2  ;;  %v1106_v4 = vadd.f32 %v2431_v41, %v1105_v3 }
 0xb4f   :  { %v1083_v14 = vadd.f32 %v2461_v63, %v1082_v2 }
 0xb50   :  { %v1230_v49 = vsel %vm217_vm8, %v1106_v4, -inf }
 0xb51   :  { %v1227_v11 = vsel %vm217_vm8, %v1083_v14, -inf  ;;  %1231 = vmax.xlane.f32.xlu0 %v1230_v49 }
 0xb52   :  { %1228 = vmax.xlane.f32.xlu2 %v1227_v11 }
 0xb55   :  { %v1107_v13 = vpop.f32.mrf.mxu3 }
 0xb56   :  { %v1084_v50 = vpop.f32.mrf.mxu2 }
 0xb58   :  { %v1059_v16 = vpop.f32.mrf.mxu1 }
 0xb59   :  { %v2718_v18 = vadd.f32 %v2455_v57, %v1059_v16 }
 0xb5a   :  { %1246 = vmax.xlane.f32.xlu2 %v1245_v19 }
 0xb5b   :  { %v1224_v41 = vsel %vm217_vm8, %v2718_v18, -inf }
 0xb5c   :  { %1225 = vmax.xlane.f32.xlu1 %v1224_v41 }
 0xb5d   :  { %v1197_v63 = vpop.f32.mrf.mxu3 }
 0xb5e   :  { %v1174_v20 = vpop.f32.mrf.mxu2  ;;  %v1198_v33 = vadd.f32 %v2448_v53, %v1197_v63 }
 0xb5f   :  { %v1175_v23 = vadd.f32 %v2468_v6, %v1174_v20 }
 0xb60   :  { %v1061_v24 = vpop.f32.mrf.mxu1  ;;  %v1242_v34 = vsel %vm217_vm8, %v1198_v33, -inf }
 0xb61   :  { %v1239_v57 = vsel %vm217_vm8, %v1175_v23, -inf }
 0xb62   :  { %1240 = vmax.xlane.f32.xlu2 %v1239_v57 }
 0xb64   :  { %1234 = vmax.xlane.f32.xlu1 %v1233_v26 }
 0xb65   :  { %v1199_v27 = vpop.f32.mrf.mxu3  ;;  %1341 = vrot.lane.b32.xlu0 %v2670_v31, %s2218_s2 }
 0xb66   :  { %v1176_v28 = vpop.f32.mrf.mxu2 }
 0xb68   :  { %v1151_v29 = vpop.f32.mrf.mxu1 }
 0xb69   :  { %v2740_v59 = vadd.f32 %v2476_v22, %v1151_v29 }
 0xb6b   :  { %v1236_v46 = vsel %vm217_vm8, %v2740_v59, -inf }
 0xb70   :  { %v1153_v32 = vpop.f32.mrf.mxu1 }
 0xb8f   :  { %1243 = vmax.xlane.f32.xlu0 %v1242_v34 }
 0xbc4   :  { %v1232_v6 = vpop.xlane.xlu0 %1231 }
 0xbc5   :  { %v1229_v35 = vpop.xlane.xlu2 %1228  ;;  %v1250_v38 = vsub.f32 %v1106_v4, %v1232_v6 }
 0xbc6   :  { %v1249_v39 = vsub.f32 %v1083_v14, %v1229_v35 }
 0xbc7   :  { %v1260_v44 = vmul.f32 1.442695, %v1250_v38 }
 0xbc8   :  { %v1258_v7 = vmul.f32 1.442695, %v1249_v39 }
 0xbc9   :  { %2142 = vpow2.f32 %v1260_v44 }
 0xbca   :  { %2144 = vpow2.f32 %v1258_v7 }
 0xbcd   :  { %v1247_v15 = vpop.xlane.xlu2 %1246 }
 0xbce   :  { %v1255_v52 = vsub.f32 %v1221_v12, %v1247_v15 }
 0xbcf   :  { %v2143_v0 = vpop.eup %2142  ;;  %v1226_v45 = vpop.xlane.xlu1 %1225 }
 0xbd0   :  { %v2145_v47 = vpop.eup %2144  ;;  %v1278_v31 = vsel %vm217_vm8, %v2143_v0, 0.0  ;;  %v1270_v60 = vmul.f32 1.442695, %v1255_v52 }
 0xbd1   :  { %v1275_v48 = vsel %vm217_vm8, %v2145_v47, 0.0  ;;  %1279 = vadd.xlane.f32.xlu2 %v1278_v31 }
 0xbd2   :  { %1276 = vadd.xlane.f32.xlu0 %v1275_v48 }
 0xbd7   :  { %v1235_v53 = vpop.xlane.xlu1 %1234  ;;  %v1342_v51 = vpop.permute.xlu0 %1341 }
 0xbd8   :  { %v1251_v54 = vsub.f32 %v1129_v42, %v1235_v53  ;;  %v1347_v55 = vsel %vm499_vm9, %v1342_v51, 0 }
 0xbd9   :  { %1356 = vmatpush.bf16.msrb.mxu2 %v1347_v55 }
 0xbda   :  { %v1262_v56 = vmul.f32 1.442695, %v1251_v54 }
 0xbdc   :  { %2146 = vpow2.f32 %v1262_v56 }
 0xbdd   :  { %2148 = vpow2.f32 %v1270_v60 }
 0xbe2   :  { %v2147_v58 = vpop.eup %2146 }
 0xbe3   :  { %v1281_v61 = vsel %vm217_vm8, %v2147_v58, 0.0  ;;  %v2752_v22 = vpop.eup %2148 }
 0xbe4   :  { %1282 = vadd.xlane.f32.xlu1 %v1281_v61 }
 0xbe6   :  { %1383 = vrot.lane.b32.xlu0 %v2660_v21, %s2218_s2  ;;  %v1248_v21 = vsub.f32 %v2718_v18, %v1226_v45 }
 0xbe8   :  { %v1256_v62 = vmul.f32 1.442695, %v1248_v21 }
 0xbe9   :  { %1362 = vrot.lane.b32.xlu2 %v2668_v30, %s2218_s2  ;;  %v1293_v30 = vsel %vm217_vm8, %v2752_v22, 0.0 }
 0xbea   :  { %2150 = vpow2.f32 %v1256_v62 }
 0xbec   :  { %1237 = vmax.xlane.f32.xlu1 %v1236_v46 }
 0xbee   :  { %1425 = vrot.lane.b32.xlu0 %v2676_v36, %s2218_s2  ;;  %v1241_v36 = vpop.xlane.xlu2 %1240 }
 0xbf0   :  { %v2757_v8 = vpop.eup %2150 }
 0xbf1   :  { %v1272_v1 = vsel %vm217_vm8, %v2757_v8, 0.0 }
 0xbf6   :  { %1467 = vrot.lane.b32.xlu0 %v2664_v25, %s2218_s2  ;;  %v1253_v25 = vsub.f32 %v1175_v23, %v1241_v36 }
 0xc02   :  { %v1244_v3 = vpop.xlane.xlu0 %1243 }
 0xc03   :  { %v1254_v2 = vsub.f32 %v1198_v33, %v1244_v3 }
 0xc05   :  { %1446 = vrot.lane.b32.xlu1 %v2678_v37, %s2218_s2  ;;  %v1266_v37 = vmul.f32 1.442695, %v1253_v25  ;;  %v1268_v4 = vmul.f32 1.442695, %v1254_v2 }
 0xc07   :  { %2152 = vpow2.f32 %v1266_v37 }
 0xc08   :  { %2154 = vpow2.f32 %v1268_v4 }
 0xc0d   :  { %v2153_v14 = vpop.eup %2152 }
 0xc0e   :  { %v1287_v49 = vsel %vm217_vm8, %v2153_v14, 0.0  ;;  %v2155_v11 = vpop.eup %2154 }
 0xc0f   :  { %v1290_v12 = vsel %vm217_vm8, %v2155_v11, 0.0 }
 0xc12   :  { %1294 = vadd.xlane.f32.xlu2 %v1293_v30 }
 0xc20   :  { %1273 = vadd.xlane.f32.xlu0 %v1272_v1 }
 0xc2a   :  { %1404 = vrot.lane.b32.xlu2 %v2686_v40, %s2218_s2 }
 0xc2f   :  { %1288 = vadd.xlane.f32.xlu1 %v1287_v49 }
 0xc37   :  { %1291 = vadd.xlane.f32.xlu1 %v1290_v12 }
 0xc44   :  { %v1280_v13 = vpop.xlane.xlu2 %1279 }
 0xc45   :  { %2156 = vrcp.f32 %v1280_v13  ;;  %v1277_v50 = vpop.xlane.xlu0 %1276 }
 0xc46   :  { %2158 = vrcp.f32 %v1277_v50 }
 0xc4b   :  { %v2157_v16 = vpop.eup %2156 }
 0xc4c   :  { %v2159_v18 = vpop.eup %2158  ;;  %v1306_v19 = vmul.f32 %v2157_v16, %v2143_v0  ;;  %v1363_v41 = vpop.permute.xlu2 %1362 }
 0xc4d   :  { %v1305_v63 = vmul.f32 %v2159_v18, %v2145_v47  ;;  %v1368_v40 = vsel %vm499_vm9, %v1363_v41, 0 }
 0xc4e   :  { %v1314_v20 = vpack.c.bf16 %v1306_v19, %v1306_v19  ;;  %1377 = vmatpush.bf16.msrb.mxu3 %v1368_v40 }
 0xc4f   :  { %v1313_v17 = vpack.c.bf16 %v1305_v63, %v1305_v63 }
 0xc50   :  { %1320 = vrot.lane.b32.xlu1 %v2688_v43, %s2218_s2 }
 0xc51   :  { %1959 = vmatmul.msk.bf16.vlgmr.msrb.gmra.mxu2 %vm217_vm8, %v1313_v17  ;;  %1960 = vmatmul.msk.bf16.vlgmr.msrb.gmra.mxu3 %vm217_vm8, %v1314_v20 }
 0xc57   :  { %v1283_v42 = vpop.xlane.xlu1 %1282 }
 0xc58   :  { %2160 = vrcp.f32 %v1283_v42  ;;  %v1384_v23 = vpop.permute.xlu0 %1383 }
 0xc59   :  { %v1389_v24 = vsel %vm499_vm9, %v1384_v23, 0 }
 0xc5a   :  { %1398 = vmatpush.bf16.msra.mxu0 %v1389_v24 }
 0xc5e   :  { %v2161_v57 = vpop.eup %2160 }
 0xc5f   :  { %v1307_v26 = vmul.f32 %v2161_v57, %v2147_v58  ;;  %v1238_v43 = vpop.xlane.xlu1 %1237 }
 0xc60   :  { %v1426_v27 = vpop.permute.xlu0 %1425  ;;  %v1252_v32 = vsub.f32 %v2740_v59, %v1238_v43 }
 0xc61   :  { %v1315_v28 = vpack.c.bf16 %v1307_v26, %v1307_v26  ;;  %v1431_v29 = vsel %vm499_vm9, %v1426_v27, 0 }
 0xc62   :  { %1440 = vmatpush.bf16.msra.mxu2 %v1431_v29  ;;  %v1264_v6 = vmul.f32 1.442695, %v1252_v32 }
 0xc63   :  { %1961 = vmatmul.msk.bf16.vlgmr.msra.gmra.mxu0 %vm217_vm8, %v1315_v28 }
 0xc64   :  { %2162 = vpow2.f32 %v1264_v6 }
 0xc68   :  { %v1468_v33 = vpop.permute.xlu0 %1467 }
 0xc69   :  { %v1473_v34 = vsel %vm499_vm9, %v1468_v33, 0 }
 0xc6a   :  { %1482 = vmatpush.bf16.msrb.mxu0 %v1473_v34  ;;  %v2163_v35 = vpop.eup %2162 }
 0xc6b   :  { %v1284_v44 = vsel %vm217_vm8, %v2163_v35, 0.0 }
 0xc77   :  { %v1447_v38 = vpop.permute.xlu1 %1446 }
 0xc78   :  { %v1452_v39 = vsel %vm499_vm9, %v1447_v38, 0  ;;  %v2046_v38 = vld [vmem:[%s2884_s6 + $0x18] sm:$0xff] }
 0xc79   :  { %1461 = vmatpush.bf16.msra.mxu3 %v1452_v39  ;;  %v2045_v39 = vld [vmem:[%s2884_s6 + $0x10] sm:$0xff] }
 0xc7a   :  { %1285 = vadd.xlane.f32.xlu1 %v1284_v44 }
 0xc85   :  { %v1295_v7 = vpop.xlane.xlu2 %1294 }
 0xc86   :  { %2164 = vrcp.f32 %v1295_v7 }
 0xc8c   :  { %v2165_v0 = vpop.eup %2164 }
 0xc8d   :  { %v1311_v45 = vmul.f32 %v2165_v0, %v2752_v22  ;;  %v1405_v46 = vpop.permute.xlu2 %1404 }
 0xc8e   :  { %v1410_v22 = vsel %vm499_vm9, %v1405_v46, 0 }
 0xc8f   :  { %v1319_v47 = vpack.c.bf16 %v1311_v45, %v1311_v45 }
 0xc91   :  { %1965 = vmatmul.msk.bf16.vlgmr.msrb.gmra.mxu0 %vm217_vm8, %v1319_v47 }
 0xc93   :  { %v1274_v61 = vpop.xlane.xlu0 %1273 }
 0xca2   :  { %v1289_v31 = vpop.xlane.xlu1 %1288 }
 0xca3   :  { %2166 = vrcp.f32 %v1289_v31 }
 0xca9   :  { %v2167_v48 = vpop.eup %2166 }
 0xcaa   :  { %v1309_v53 = vmul.f32 %v2167_v48, %v2153_v14  ;;  %v1292_v51 = vpop.xlane.xlu1 %1291 }
 0xcab   :  { %2168 = vrcp.f32 %v1292_v51 }
 0xcac   :  { %v1317_v54 = vpack.c.bf16 %v1309_v53, %v1309_v53  ;;  %2170 = vrcp.f32 %v1274_v61 }
 0xcae   :  { %1963 = vmatmul.msk.bf16.vlgmr.msra.gmra.mxu2 %vm217_vm8, %v1317_v54 }
 0xcb1   :  { %v2169_v55 = vpop.eup %2168 }
 0xcb2   :  { %v1310_v56 = vmul.f32 %v2169_v55, %v2155_v11  ;;  %v2171_v59 = vpop.eup %2170 }
 0xcb3   :  { %v1304_v15 = vmul.f32 %v2171_v59, %v2757_v8 }
 0xcb4   :  { %v1318_v58 = vpack.c.bf16 %v1310_v56, %v1310_v56 }
 0xcb5   :  { %v1312_v21 = vpack.c.bf16 %v1304_v15, %v1304_v15  ;;  %v2084_v15 = vld [vmem:[%s2885_s7 + $0x1] ss:$0 sm:$0xff] }
 0xcb6   :  { %1964 = vmatmul.msk.bf16.vlgmr.msra.gmra.mxu3 %vm217_vm8, %v1318_v58 }
 0xcc2   :  { %v1321_v52 = vpop.permute.xlu1 %1320 }
 0xcc3   :  { %v1326_v60 = vsel %vm499_vm9, %v1321_v52, 0 }
 0xcc4   :  { %1335 = vmatpush.bf16.msrb.mxu1 %v1326_v60 }
 0xcc7   :  { %1958 = vmatmul.msk.bf16.vlgmr.msrb.gmra.mxu1 %vm217_vm8, %v1312_v21 }
 0xcc8   :  { %1419 = vmatpush.bf16.msra.mxu1 %v1410_v22 }
 0xccc   :  { %1574 = vmatpush.bf16.msrb.mxu1 %v2046_v38 }
 0xcd0   :  { %1575 = vmatpush.bf16.msrb.mxu1 %v2045_v39 }
 0xcd4   :  { %v1358_v30 = vpop.f32.mrf.mxu2  ;;  %v1379_v62 = vpop.f32.mrf.mxu3 }
 0xcd5   :  { %v1489_v36 = vpack.c.bf16 %v1358_v30, %v1358_v30  ;;  %v1490_v40 = vpack.c.bf16 %v1379_v62, %v1379_v62 }
 0xcd7   :  { %v1497_v25 = vunpack.c.l.b16 %v1489_v36  ;;  %v1502_v23 = vunpack.c.l.b16 %v1490_v40 }
 0xcd9   :  { %v1498_v1 = vpack.c.b16 %v1497_v25, %v1497_v25  ;;  %v1503_v26 = vpack.c.b16 %v1502_v23, %v1502_v23 }
 0xcdb   :  { %1499 = vrot.lane.b32.xlu2 %v1498_v1, %s2911_s3 }
 0xcdc   :  { %v1360_v37 = vpop.f32.mrf.mxu2  ;;  %v1381_v3 = vpop.f32.mrf.mxu3 }
 0xce0   :  { %v1400_v8 = vpop.f32.mrf.mxu0 }
 0xce1   :  { %v1491_v27 = vpack.c.bf16 %v1400_v8, %v1400_v8 }
 0xce3   :  { %v1507_v43 = vunpack.c.l.b16 %v1491_v27 }
 0xce5   :  { %v1508_v33 = vpack.c.b16 %v1507_v43, %v1507_v43  ;;  %v2085_v43 = vld [vmem:[%s2886_s8 + $0x1] ss:$0 sm:$0xff] }
 0xce8   :  { %v1402_v2 = vpop.f32.mrf.mxu0 }
 0xced   :  { %v1286_v4 = vpop.xlane.xlu1 %1285 }
 0xcee   :  { %2172 = vrcp.f32 %v1286_v4 }
 0xcf4   :  { %v2173_v14 = vpop.eup %2172 }
 0xcf5   :  { %v1308_v49 = vmul.f32 %v2173_v14, %v2163_v35 }
 0xcf7   :  { %v1316_v11 = vpack.c.bf16 %v1308_v49, %v1308_v49 }
 0xcf9   :  { %1962 = vmatmul.msk.bf16.vlgmr.msra.gmra.mxu1 %vm217_vm8, %v1316_v11 }
 0xd0e   :  { %v1484_v12 = vpop.f32.mrf.mxu0 }
 0xd0f   :  { %v1495_v13 = vpack.c.bf16 %v1484_v12, %v1484_v12 }
 0xd11   :  { %v1529_v50 = vunpack.c.l.b16 %v1495_v13 }
 0xd13   :  { %v1530_v16 = vpack.c.b16 %v1529_v50, %v1529_v50  ;;  %v2047_v50 = vld [vmem:[%s2888_s10 + $0x10] sm:$0xff] }
 0xd15   :  { %1531 = vrot.lane.b32.xlu1 %v1530_v16, %s2912_s29 }
 0xd16   :  { %v1486_v18 = vpop.f32.mrf.mxu0 }
 0xd31   :  { %v1442_v19 = vpop.f32.mrf.mxu2 }
 0xd32   :  { %v1493_v41 = vpack.c.bf16 %v1442_v19, %v1442_v19 }
 0xd34   :  { %v1519_v63 = vunpack.c.l.b16 %v1493_v41 }
 0xd35   :  { %v1500_v44 = vpop.permute.xlu2 %1499 }
 0xd36   :  { %v1520_v20 = vpack.c.b16 %v1519_v63, %v1519_v63 }
 0xd38   :  { %1521 = vrot.lane.b32.xlu0 %v1520_v20, %s2911_s3 }
 0xd39   :  { %v1444_v17 = vpop.f32.mrf.mxu2  ;;  %v1463_v42 = vpop.f32.mrf.mxu3 }
 0xd3a   :  { %v1494_v24 = vpack.c.bf16 %v1463_v42, %v1463_v42 }
 0xd3c   :  { %v1524_v57 = vunpack.c.l.b16 %v1494_v24 }
 0xd3e   :  { %v1525_v28 = vpack.c.b16 %v1524_v57, %v1524_v57 }
 0xd40   :  { %1526 = vrot.lane.b32.xlu2 %v1525_v28, %s2913_s30  ;;  %1504 = vrot.lane.b32.xlu0 %v1503_v26, %s2913_s30 }
 0xd41   :  { %v1465_v29 = vpop.f32.mrf.mxu3 }
 0xd44   :  { %v1337_v32 = vpop.f32.mrf.mxu1 }
 0xd45   :  { %v1488_v48 = vpack.c.bf16 %v1337_v32, %v1337_v32 }
 0xd47   :  { %v1513_v54 = vsel %vm217_vm8, %v1488_v48, %v1500_v44  ;;  %v2087_v48 = vld [vmem:[%s2889_s11 + $0x1] ss:$0 sm:$0xff] }
 0xd48   :  { %1509 = vrot.lane.b32.xlu2 %v1508_v33, %s2912_s29 }
 0xd4c   :  { %v1339_v34 = vpop.f32.mrf.mxu1 }
 0xd76   :  { %v1421_v6 = vpop.f32.mrf.mxu1 }
 0xd77   :  { %v1492_v7 = vpack.c.bf16 %v1421_v6, %v1421_v6  ;;  %v2086_v6 = vld [vmem:[%s2887_s9 + $0x1] ss:$0 sm:$0xff] }
 0xd7e   :  { %v1423_v35 = vpop.f32.mrf.mxu1 }
 0xd87   :  { %v1532_v53 = vpop.permute.xlu1 %1531 }
 0xd9a   :  { %v1527_v0 = vpop.permute.xlu2 %1526 }
 0xda2   :  { %v1510_v56 = vpop.permute.xlu2 %1509 }
 0xdaa   :  { %v1522_v45 = vpop.permute.xlu0 %1521 }
 0xdab   :  { %v1535_v47 = vsel %vm217_vm8, %v1492_v7, %v1522_v45  ;;  %v2052_v45 = vld [vmem:[%s2890_s12 + $0x38] sm:$0xff] }
 0xdac   :  { %v1537_v31 = vsel %vm689_vm10, %v1535_v47, %v1527_v0  ;;  %1746 = vmatpush.bf16.msrb.mxu3 %v2052_v45  ;;  %v2051_v47 = vld [vmem:[%s2890_s12 + $0x30] sm:$0xff] }
 0xdad   :  { %v1539_v51 = vsel %vm692_vm11, %v1537_v31, %v1532_v53  ;;  %v2050_v31 = vld [vmem:[%s2890_s12 + $0x28] sm:$0xff]  ;;  %v2049_v53 = vld [vmem:[%s2890_s12 + $0x20] sm:$0xff] }
 0xdae   :  { %v1541_v58 = vrot.slane %v1539_v51, 4 }
 0xdb0   :  { %1747 = vmatpush.bf16.msrb.mxu3 %v2051_v47 }
 0xdb2   :  { %v1505_v55 = vpop.permute.xlu0 %1504 }
 0xdb3   :  { %v1515_v61 = vsel %vm689_vm10, %v1513_v54, %v1505_v55 }
 0xdb4   :  { %v1517_v59 = vsel %vm692_vm11, %v1515_v61, %v1510_v56  ;;  %1748 = vmatpush.bf16.msrb.mxu3 %v2050_v31 }
 0xdb5   :  { %v1543_v46 = vsel %vm499_vm9, %v1517_v59, %v1541_v58 }
 0xdb6   :  { %1979 = vmatmul.msk.bf16.vlgmr.msrb.gmra.mxu1 %vm65_vm0, %v1543_v46 }
 0xdb8   :  { %1749 = vmatpush.bf16.msrb.mxu3 %v2049_v53 }
 0xe33   :  { %v1577_v52 = vpop.f32.mrf.mxu1 }
 0xe34   :  { %v1578_v60 = vadd.f32 %v2084_v15, %v1577_v52 }
 0xe36   :  { %v1582_v22 = vadd.f32 %v1578_v60, %v2634_v5 }
 0xe38   :  { %v1588_v21 = vsel %vm65_vm0, %v1582_v22, 0.0 }
 0xe39   :  { %1589 = vadd.xlane.f32.xlu0 %v1588_v21 }
 0xe3b   :  { %v1579_v30 = vpop.f32.mrf.mxu1 }
 0xe3c   :  { %v1580_v62 = vadd.f32 %v2084_v15, %v1579_v30 }
 0xe3e   :  { %v1583_v36 = vadd.f32 %v1580_v62, %v2636_v9  ;;  %v2048_v9 = vld [vmem:[%s2888_s10 + $0x18] sm:$0xff] }
 0xe3f   :  { %1674 = vmatpush.bf16.msrb.mxu2 %v2048_v9 }
 0xe40   :  { %v1591_v25 = vsel %vm65_vm0, %v1583_v36, 0.0 }
 0xe41   :  { %1592 = vadd.xlane.f32.xlu2 %v1591_v25 }
 0xe43   :  { %1675 = vmatpush.bf16.msrb.mxu2 %v2047_v50 }
 0xeac   :  { %v1590_v1 = vpop.xlane.xlu0 %1589 }
 0xead   :  { %v1594_v37 = vmul.f32 %v1590_v1, %v2326_v10 }
 0xeaf   :  { %v1596_v3 = vsub.f32 %v1582_v22, %v1594_v37 }
 0xeb1   :  { %v1598_v8 = vmul.f32 %v1596_v3, %v1596_v3 }
 0xeb3   :  { %v1600_v2 = vsel %vm65_vm0, %v1598_v8, 0.0 }
 0xeb4   :  { %v1593_v4 = vpop.xlane.xlu2 %1592  ;;  %1601 = vadd.xlane.f32.xlu1 %v1600_v2 }
 0xeb5   :  { %v1595_v5 = vmul.f32 %v1593_v4, %v2326_v10 }
 0xeb7   :  { %v1597_v14 = vsub.f32 %v1583_v36, %v1595_v5  ;;  %v2088_v5 = vld [vmem:[%s2891_s13 + $0x1] ss:$0 sm:$0xff] }
 0xeb9   :  { %v1599_v49 = vmul.f32 %v1597_v14, %v1597_v14 }
 0xebb   :  { %v1603_v11 = vsel %vm65_vm0, %v1599_v49, 0.0 }
 0xebc   :  { %1604 = vadd.xlane.f32.xlu0 %v1603_v11 }
 0xf27   :  { %v1602_v12 = vpop.xlane.xlu1 %1601 }
 0xf28   :  { %v1606_v13 = vmul.f32 %v1602_v12, %v2326_v10 }
 0xf2a   :  { %v1608_v16 = vadd.f32 1e-12, %v1606_v13 }
 0xf2c   :  { %2174 = vrsqrt.f32 %v1608_v16  ;;  %vm1616_vm9 = vweird.f32 %v1608_v16 }
 0xf2f   :  { %v1605_v18 = vpop.xlane.xlu0 %1604 }
 0xf30   :  { %v1607_v19 = vmul.f32 %v1605_v18, %v2326_v10 }
 0xf32   :  { %v2175_v41 = vpop.eup %2174  ;;  %v1609_v63 = vadd.f32 1e-12, %v1607_v19 }
 0xf33   :  { %v1611_v40 = vmul.f32 %v2175_v41, %v1608_v16  ;;  %vm1617_vm8 = vweird.f32 %v2175_v41 }
 0xf34   :  { %2176 = vrsqrt.f32 %v1609_v63  ;;  %vm1618_vm10 = vmor %vm1616_vm9, %vm1617_vm8  ;;  %vm1626_vm14 = vweird.f32 %v1609_v63 }
 0xf35   :  { %v1612_v20 = vmul.f32 %v2175_v41, %v1611_v40 }
 0xf37   :  { %v1613_v17 = vmul.f32 0.5, %v1612_v20 }
 0xf39   :  { %v1614_v42 = vsub.f32 1.5, %v1613_v17 }
 0xf3a   :  { %v2177_v23 = vpop.eup %2176 }
 0xf3b   :  { %v1615_v24 = vmul.f32 %v2175_v41, %v1614_v42  ;;  %v1621_v57 = vmul.f32 %v2177_v23, %v1609_v63  ;;  %vm1627_vm11 = vweird.f32 %v2177_v23 }
 0xf3c   :  { %vm1628_vm15 = vmor %vm1626_vm14, %vm1627_vm11 }
 0xf3d   :  { %v1622_v26 = vmul.f32 %v2177_v23, %v1621_v57  ;;  %v1619_v27 = vsel %vm1618_vm10, %v2175_v41, %v1615_v24 }
 0xf3e   :  { %v1630_v32 = vmul.f32 %v1619_v27, %v1596_v3  ;;  %v2054_v27 = vld [vmem:[%s2894_s16 + $0x8] sm:$0xff] }
 0xf3f   :  { %v1623_v28 = vmul.f32 0.5, %v1622_v26  ;;  %1851 = vmatpush.bf16.msra.mxu0 %v2054_v27 }
 0xf40   :  { %v1635_v35 = vmul.f32 %v2085_v43, %v1630_v32 }
 0xf41   :  { %v1624_v29 = vsub.f32 1.5, %v1623_v28 }
 0xf42   :  { %v1640_v44 = vadd.f32 %v2086_v6, %v1635_v35 }
 0xf43   :  { %v1625_v33 = vmul.f32 %v2177_v23, %v1624_v29  ;;  %v2053_v29 = vld [vmem:[%s2894_s16] sm:$0xff] }
 0xf44   :  { %1852 = vmatpush.bf16.msra.mxu0 %v2053_v29 }
 0xf45   :  { %v1629_v34 = vsel %vm1628_vm15, %v2177_v23, %v1625_v33 }
 0xf46   :  { %v1631_v38 = vmul.f32 %v1629_v34, %v1597_v14 }
 0xf48   :  { %v1636_v39 = vmul.f32 %v2085_v43, %v1631_v38 }
 0xf4a   :  { %v1641_v7 = vadd.f32 %v2086_v6, %v1636_v39 }
 0xf4c   :  { %v1642_v0 = vpack.c.bf16 %v1641_v7, %v1640_v44 }
 0xf4e   :  { %1995 = vmatmul.msk.bf16.vlgmr.msrb.gmra.mxu2 %vm65_vm0, %v1642_v0 }
 0xfd1   :  { %v1677_v51 = vpop.f32.mrf.mxu2 }
 0xfd2   :  { %v1678_v54 = vadd.f32 %v2087_v48, %v1677_v51 }
 0xfd4   :  { %v1682_v55 = vmul.f32 %v1678_v54, %v1678_v54 }
 0xfd6   :  { %v1684_v56 = vmul.f32 %v1682_v55, %v1678_v54 }
 0xfd8   :  { %v1686_v58 = vmul.f32 0.044715, %v1684_v56  ;;  %v2090_v56 = vld [vmem:[%s2893_s15 + $0x1] ss:$0 sm:$0xff]  ;;  %s1867_s15 = sshll.u32 %s2896_s18, 4  ;;  %s1868_s15 = int_to_ptr.hbm [resolvable:$true] %s1867_s15 }
 0xfd9   :  { %v1679_v61 = vpop.f32.mrf.mxu2 }
 0xfda   :  { %v1688_v59 = vadd.f32 %v1686_v58, %v1678_v54  ;;  %v1680_v46 = vadd.f32 %v2087_v48, %v1679_v61 }
 0xfdc   :  { %v1690_v15 = vmul.f32 0.7978846, %v1688_v59  ;;  %v1683_v52 = vmul.f32 %v1680_v46, %v1680_v46 }
 0xfde   :  { %v1685_v60 = vmul.f32 %v1683_v52, %v1680_v46  ;;  %2178 = vtanh.f32 %v1690_v15 }
 0xfe0   :  { %v1687_v22 = vmul.f32 0.044715, %v1685_v60 }
 0xfe2   :  { %v1689_v21 = vadd.f32 %v1687_v22, %v1680_v46  ;;  %v2091_v22 = vld [vmem:[%s2895_s17] ss:$0 sm:$0xff] }
 0xfe4   :  { %v1691_v30 = vmul.f32 0.7978846, %v1689_v21  ;;  %v2179_v62 = vpop.eup %2178 }
 0xfe5   :  { %v1694_v36 = vadd.f32 1.0, %v2179_v62 }
 0xfe6   :  { %2180 = vtanh.f32 %v1691_v30 }
 0xfe7   :  { %v1696_v1 = vmul.f32 0.5, %v1694_v36 }
 0xfe9   :  { %v1698_v8 = vmul.f32 %v1696_v1, %v1678_v54 }
 0xfec   :  { %v2181_v25 = vpop.eup %2180 }
 0xfed   :  { %v1695_v37 = vadd.f32 1.0, %v2181_v25 }
 0xfef   :  { %v1697_v3 = vmul.f32 0.5, %v1695_v37 }
 0xff1   :  { %v1699_v2 = vmul.f32 %v1697_v3, %v1680_v46 }
 0xff3   :  { %v1700_v4 = vpack.c.bf16 %v1699_v2, %v1698_v8 }
 0xff5   :  { %2021 = vmatmul.msk.bf16.vlgmr.msrb.gmra.mxu3 %vm908_vm3, %v1700_v4 }
0x1078   :  { %v1751_v14 = vpop.f32.mrf.mxu3 }
0x1079   :  { %v1752_v49 = vadd.f32 %v2088_v5, %v1751_v14 }
0x107b   :  { %v1756_v11 = vadd.f32 %v1752_v49, %v1640_v44 }
0x107d   :  { %v1762_v9 = vsel %vm65_vm0, %v1756_v11, 0.0 }
0x107e   :  { %1763 = vadd.xlane.f32.xlu0 %v1762_v9 }
0x1080   :  { %v1753_v12 = vpop.f32.mrf.mxu3 }
0x1081   :  { %v1754_v13 = vadd.f32 %v2088_v5, %v1753_v12 }
0x1083   :  { %v1757_v50 = vadd.f32 %v1754_v13, %v1641_v7 }
0x1085   :  { %v1765_v16 = vsel %vm65_vm0, %v1757_v50, 0.0 }
0x1086   :  { %1766 = vadd.xlane.f32.xlu2 %v1765_v16 }
0x10f1   :  { %v1764_v18 = vpop.xlane.xlu0 %1763 }
0x10f2   :  { %v1768_v19 = vmul.f32 %v1764_v18, %v2326_v10 }
0x10f4   :  { %v1770_v41 = vsub.f32 %v1756_v11, %v1768_v19 }
0x10f6   :  { %v1772_v63 = vmul.f32 %v1770_v41, %v1770_v41 }
0x10f8   :  { %v1774_v40 = vsel %vm65_vm0, %v1772_v63, 0.0 }
0x10f9   :  { %v1767_v20 = vpop.xlane.xlu2 %1766  ;;  %1775 = vadd.xlane.f32.xlu1 %v1774_v40 }
0x10fa   :  { %v1769_v17 = vmul.f32 %v1767_v20, %v2326_v10 }
0x10fc   :  { %v1771_v42 = vsub.f32 %v1757_v50, %v1769_v17 }
0x10fe   :  { %v1773_v23 = vmul.f32 %v1771_v42, %v1771_v42 }
0x1100   :  { %v1777_v24 = vsel %vm65_vm0, %v1773_v23, 0.0 }
0x1101   :  { %1778 = vadd.xlane.f32.xlu2 %v1777_v24 }
0x116c   :  { %v1776_v57 = vpop.xlane.xlu1 %1775 }
0x116d   :  { %v1780_v26 = vmul.f32 %v1776_v57, %v2326_v10 }
0x116f   :  { %v1782_v28 = vadd.f32 1e-12, %v1780_v26 }
0x1171   :  { %2182 = vrsqrt.f32 %v1782_v28  ;;  %vm1790_vm2 = vweird.f32 %v1782_v28 }
0x1174   :  { %v1779_v43 = vpop.xlane.xlu2 %1778 }
0x1175   :  { %v1781_v32 = vmul.f32 %v1779_v43, %v2326_v10  ;;  %v2089_v10 = vld [vmem:[%s2892_s14 + $0x1] ss:$0 sm:$0xff] }
0x1177   :  { %v2183_v33 = vpop.eup %2182  ;;  %v1783_v34 = vadd.f32 1e-12, %v1781_v32 }
0x1178   :  { %v1785_v6 = vmul.f32 %v2183_v33, %v1782_v28  ;;  %vm1791_vm1 = vweird.f32 %v2183_v33 }
0x1179   :  { %2184 = vrsqrt.f32 %v1783_v34  ;;  %vm1792_vm3 = vmor %vm1790_vm2, %vm1791_vm1  ;;  %vm1800_vm5 = vweird.f32 %v1783_v34 }
0x117a   :  { %v1786_v35 = vmul.f32 %v2183_v33, %v1785_v6 }
0x117c   :  { %v1787_v38 = vmul.f32 0.5, %v1786_v35 }
0x117e   :  { %v1788_v39 = vsub.f32 1.5, %v1787_v38 }
0x117f   :  { %v2185_v44 = vpop.eup %2184 }
0x1180   :  { %v1795_v7 = vmul.f32 %v2185_v44, %v1783_v34  ;;  %v1789_v0 = vmul.f32 %v2183_v33, %v1788_v39  ;;  %vm1801_vm4 = vweird.f32 %v2185_v44 }
0x1181   :  { %vm1802_vm6 = vmor %vm1800_vm5, %vm1801_vm4 }
0x1182   :  { %v1796_v45 = vmul.f32 %v2185_v44, %v1795_v7  ;;  %v1793_v31 = vsel %vm1792_vm3, %v2183_v33, %v1789_v0 }
0x1183   :  { %v1804_v51 = vmul.f32 %v1793_v31, %v1770_v41 }
0x1184   :  { %v1797_v47 = vmul.f32 0.5, %v1796_v45 }
0x1185   :  { %v1809_v58 = vmul.f32 %v2089_v10, %v1804_v51 }
0x1186   :  { %v1798_v48 = vsub.f32 1.5, %v1797_v47 }
0x1187   :  { %v1814_v46 = vadd.f32 %v2090_v56, %v1809_v58 }
0x1188   :  { %v1799_v53 = vmul.f32 %v2185_v44, %v1798_v48 }
0x118a   :  { %v1803_v54 = vsel %vm1802_vm6, %v2185_v44, %v1799_v53 }
0x118b   :  { %v1805_v55 = vmul.f32 %v1803_v54, %v1771_v42 }
0x118d   :  { %v1810_v61 = vmul.f32 %v2089_v10, %v1805_v55 }
0x118f   :  { %v1815_v59 = vadd.f32 %v2090_v56, %v1810_v61 }
0x1191   :  { %v1817_v15 = vrot.slane %v1815_v59, 7 }
0x1193   :  { %v1820_v52 = vsel %vm1819_vm7, %v1814_v46, %v1817_v15 }
0x1194   :  { %v1821_v60 = vpack.c.bf16 %v1820_v52, %v1820_v52 }
0x1196   :  { %2032 = vmatmul.msk.bf16.vlgmr.msra.gmra.mxu0 %vm65_vm0, %v1821_v60 }
0x1213   :  { %v1854_v21 = vpop.f32.mrf.mxu0 }
0x1214   :  { %v1855_v30 = vadd.f32 %v2091_v22, %v1854_v21 }
0x1216   :  { %1859 = vst.msk [vmem:[#allocation2] sm:$0x3] %vm1858_vm12, %v1855_v30 }
0x1217   :  { %1870 = dma.vmem_to_hbm [thread:$0]  %s1866_s4, 32, %s1868_s15, [#allocation3]  }
0x121b   :  { %v1856_v62 = vpop.f32.mrf.mxu0 }
0x121c   :  { %2211 = dma.done.wait [#allocation3], 32  }
0x121d   :  { %2212 = vsyncadd [#allocation3], 4294967264 }
0x121e   :  { %1875 = vsyncpa [#allocation3], 1 }

</bundles_post_ra>
